<compile_context>
chip_gen: v7x
topology: tpu7x:2x2x1
jax: 0.10.0
libtpu: 0.0.40
codegen_flags: <defaults>
</compile_context>

<pallas_src>
import functools

import jax
import jax.numpy as jnp
import numpy as np
from jax import lax
from jax.experimental import pallas as pl
from jax.experimental.pallas import tpu as pltpu


def _asym_conv_kernel(*refs, H, W, Cin, Cout, nb, identity_shortcut):
    """Processes `nb` batch elements per grid step in (C, H*W) lane-dense layout.

    refs (identity shortcut):
      x_ref     : (nb, Cin, HW)      input, flattened NCHW
      w_ref     : (5*Cout*Cin,) SMEM taps [up, down, left, right, merged-centre]
      b2_ref    : (Cout,)       SMEM conv2 bias
      alpha_ref : (1,)          SMEM PReLU slope
      o_ref     : (nb, Cout, HW)
    For a 1x1-conv shortcut (in_cha != out_cha) a ws_ref (Cout*Cin,) SMEM array
    is added before o_ref.
    """
    if identity_shortcut:
        x_ref, w_ref, b2_ref, alpha_ref, o_ref = refs
        ws_ref = None
    else:
        x_ref, w_ref, b2_ref, alpha_ref, ws_ref, o_ref = refs

    HW = H * W
    f32 = jnp.float32

    # ---- hoisted once per grid step (shared by every batch element) --------
    # SMEM scalar reads; order of w_ref is [tap, co, ci] with taps
    # 0=up, 1=down, 2=left, 3=right, 4=merged-centre.
    w = [[[w_ref[(t * Cout + co) * Cin + ci] for ci in range(Cin)]
          for co in range(Cout)] for t in range(5)]
    bias = [b2_ref[co] for co in range(Cout)]
    alpha = alpha_ref[0]
    ws = None
    if not identity_shortcut:
        ws = [[ws_ref[co * Cin + ci] for ci in range(Cin)] for co in range(Cout)]

    # Halo-validity masks generated in-kernel (drops the (4,HW) mask input).
    pos = lax.broadcasted_iota(jnp.int32, (1, HW), 1)
    if (W & (W - 1)) == 0:
        col = jnp.bitwise_and(pos, W - 1)          # W power of two: cheap AND
    else:
        # TODO(synk): if integer remainder lowering is ever an issue for
        # non-power-of-two W, pass the column-index vector from the wrapper.
        col = jnp.remainder(pos, W)
    m_up = (pos >= W).astype(f32)                  # h > 0
    m_dn = (pos < HW - W).astype(f32)              # h < H-1
    m_lf = (col != 0).astype(f32)                  # w > 0
    m_rt = (col != W - 1).astype(f32)              # w < W-1

    def process(b):
        x = x_ref[b].astype(f32)                               # (Cin, HW)

        # Shifted taps via XLU lane rotation; pltpu.roll follows jnp.roll:
        # result[p] = x[p - shift].  Masks zero the wrapped (halo) positions.
        up = pltpu.roll(x, shift=W, axis=1) * m_up             # x[h-1, w]
        dn = pltpu.roll(x, shift=HW - W, axis=1) * m_dn        # x[h+1, w]
        lf = pltpu.roll(x, shift=1, axis=1) * m_lf             # x[h, w-1]
        rt = pltpu.roll(x, shift=HW - 1, axis=1) * m_rt        # x[h, w+1]
        side_taps = (up, dn, lf, rt)

        # conv1 (3,1) + conv2 (1,3); centre taps merged in the wrapper.
        rows = []
        for co in range(Cout):
            acc = w[4][co][0] * x[0:1, :]
            for ci in range(1, Cin):
                acc = acc + w[4][co][ci] * x[ci:ci + 1, :]
            for t in range(4):
                tp = side_taps[t]
                for ci in range(Cin):
                    acc = acc + w[t][co][ci] * tp[ci:ci + 1, :]
            rows.append(acc + bias[co])                        # conv2 bias
        pre = jnp.concatenate(rows, axis=0)                    # (Cout, HW)

        act = jnp.where(pre >= 0.0, pre, alpha * pre)          # PReLU (scalar)

        if identity_shortcut:
            out = act + x                      # shortcut = identity
        else:
            srows = []
            for co in range(Cout):
                s = ws[co][0] * x[0:1, :]
                for ci in range(1, Cin):
                    s = s + ws[co][ci] * x[ci:ci + 1, :]
                srows.append(s)
            out = act + jnp.concatenate(srows, axis=0)         # 1x1 shortcut

        o_ref[b] = out.astype(o_ref.dtype)

    if nb <= 8:
        # Small batch blocks: static unroll (LLO scheduler visibility).
        for b in range(nb):
            process(b)
    else:
        # Large batch blocks: counted loop bounds code size / live ranges.
        def fbody(b, carry):
            process(b)
            return carry
        lax.fori_loop(0, nb, fbody, 0)


def asymmetric_convolution(x_nchw, w1_oihw, w2_oihw, b2, alpha, ws=None, *,
                           batch_block=None, io_dtype=jnp.float32):
    """Forward pass matching AsymmetricConvolution.forward (NCHW in / NCHW out).

    ws: optional (Cout, Cin) 1x1-conv shortcut weight (bias-free, as in the
        PyTorch module); None -> identity shortcut (requires in_cha == out_cha).
    io_dtype: HBM I/O dtype.  Keep float32 on v5e; bfloat16 halves HBM traffic
        on v6e/v7x (accumulation stays float32 in-kernel).
    """
    N, Cin, H, W = x_nchw.shape
    Cout = w1_oihw.shape[0]
    HW = H * W
    identity = ws is None
    if identity:
        assert Cin == Cout, "identity shortcut requires in_cha == out_cha"

    if batch_block is None:
        # Two "parallel" grid steps keep both v7x TensorCores busy; on 1-TC
        # parts (v5e/v6e) the second step only costs ~0.35us of overhead.
        # TODO(synk): plumb the real core count if exact step counts matter.
        batch_block = N // 2 if (N % 2 == 0 and N >= 2) else N
    nb = batch_block
    assert N % nb == 0, "batch_block must divide N"

    # Free reshape: NCHW -> (N, C, H*W); H*W (multiple of 128 here) on lanes.
    x_flat = x_nchw.reshape(N, Cin, HW).astype(io_dtype)

    # torch conv1 weight [O, I, 3, 1] / conv2 weight [O, I, 1, 3].
    w1 = w1_oihw[:, :, :, 0].astype(jnp.float32)   # (Cout, Cin, 3) over H taps
    w2 = w2_oihw[:, :, 0, :].astype(jnp.float32)   # (Cout, Cin, 3) over W taps
    w_stack = jnp.stack(
        [w1[:, :, 0],                    # up    tap: x[h-1, w]
         w1[:, :, 2],                    # down  tap: x[h+1, w]
         w2[:, :, 0],                    # left  tap: x[h, w-1]
         w2[:, :, 2],                    # right tap: x[h, w+1]
         w1[:, :, 1] + w2[:, :, 1]],     # merged centre tap (conv1 + conv2)
        axis=0)                          # (5, Cout, Cin)
    w_smem = w_stack.reshape(-1)                              # (5*Cout*Cin,)
    b2_smem = jnp.asarray(b2, jnp.float32).reshape(-1)        # (Cout,)
    alpha_smem = jnp.asarray(alpha, jnp.float32).reshape(1)   # (1,)

    kernel = functools.partial(_asym_conv_kernel, H=H, W=W, Cin=Cin, Cout=Cout,
                               nb=nb, identity_shortcut=identity)

    smem_spec = pl.BlockSpec(memory_space=pltpu.MemorySpace.SMEM)
    in_specs = [
        pl.BlockSpec((nb, Cin, HW), lambda n: (n, 0, 0)),
        smem_spec,    # taps
        smem_spec,    # conv2 bias
        smem_spec,    # PReLU slope
    ]
    args = [x_flat, w_smem, b2_smem, alpha_smem]
    if not identity:
        in_specs.append(smem_spec)
        args.append(jnp.asarray(ws, jnp.float32).reshape(-1))

    # Explicit VMEM budget: double-buffered input + output blocks.
    itemsize = jnp.dtype(io_dtype).itemsize
    vmem_needed = 2 * (nb * Cin * HW + nb * Cout * HW) * itemsize
    cp_kwargs = dict(dimension_semantics=("parallel",))
    if vmem_needed > (8 << 20):
        cp_kwargs["vmem_limit_bytes"] = int(min(2 * vmem_needed + (1 << 20),
                                                100 << 20))

    out_flat = pl.pallas_call(
        kernel,
        out_shape=jax.ShapeDtypeStruct((N, Cout, HW), io_dtype),
        grid=(N // nb,),
        in_specs=in_specs,
        out_specs=pl.BlockSpec((nb, Cout, HW), lambda n: (n, 0, 0)),
        compiler_params=pltpu.CompilerParams(**cp_kwargs),
    )(*args)

    # Free reshape back to NCHW.
    return out_flat.reshape(N, Cout, H, W).astype(x_nchw.dtype)


def _reference_forward(x, w1_oihw, w2_oihw, b2, alpha, ws=None):
    """Pure-JAX reference for AsymmetricConvolution.forward."""
    dn = ('NCHW', 'OIHW', 'NCHW')
    x1 = lax.conv_general_dilated(x, w1_oihw, (1, 1), ((1, 1), (0, 0)),
                                  dimension_numbers=dn)
    x2 = lax.conv_general_dilated(x, w2_oihw, (1, 1), ((0, 0), (1, 1)),
                                  dimension_numbers=dn)
    x2 = x2 + b2[None, :, None, None]
    pre = x1 + x2
    act = jnp.where(pre >= 0.0, pre, alpha * pre)
    if ws is None:
        shortcut = x
    else:
        w11 = ws.reshape(ws.shape[0], ws.shape[1], 1, 1)
        shortcut = lax.conv_general_dilated(x, w11, (1, 1), ((0, 0), (0, 0)),
                                            dimension_numbers=dn)
    return act + shortcut


if __name__ == "__main__":
    key = jax.random.PRNGKey(0)
    k_x, k_w1, k_w2, k_b2, k_ws, k_w1b, k_w2b, k_b2b = jax.random.split(key, 8)

    N, Cin, H, W = 2, 4, 16, 16
    alpha = jnp.float32(0.25)   # nn.PReLU default init (single shared slope)

    x = jax.random.normal(k_x, (N, Cin, H, W), dtype=jnp.float32)

    # Case 1: in_cha == out_cha -> identity shortcut.
    Cout = Cin
    w1 = 0.1 * jax.random.normal(k_w1, (Cout, Cin, 3, 1), dtype=jnp.float32)
    w2 = 0.1 * jax.random.normal(k_w2, (Cout, Cin, 1, 3), dtype=jnp.float32)
    b2 = 0.1 * jax.random.normal(k_b2, (Cout,), dtype=jnp.float32)

    out = jax.block_until_ready(asymmetric_convolution(x, w1, w2, b2, alpha))
    ref = _reference_forward(x, w1, w2, b2, alpha)
    np.testing.assert_allclose(np.asarray(out), np.asarray(ref),
                               rtol=1e-5, atol=1e-5)

    # Case 2: in_cha != out_cha -> 1x1-conv (bias-free) shortcut.
    Cout2 = 8
    w1b = 0.1 * jax.random.normal(k_w1b, (Cout2, Cin, 3, 1), dtype=jnp.float32)
    w2b = 0.1 * jax.random.normal(k_w2b, (Cout2, Cin, 1, 3), dtype=jnp.float32)
    b2b = 0.1 * jax.random.normal(k_b2b, (Cout2,), dtype=jnp.float32)
    ws = 0.1 * jax.random.normal(k_ws, (Cout2, Cin), dtype=jnp.float32)

    out2 = jax.block_until_ready(
        asymmetric_convolution(x, w1b, w2b, b2b, alpha, ws=ws))
    ref2 = _reference_forward(x, w1b, w2b, b2b, alpha, ws=ws)
    np.testing.assert_allclose(np.asarray(out2), np.asarray(ref2),
                               rtol=1e-5, atol=1e-5)

    print("KERNEL_OK")
</pallas_src>

<mosaic_0001>
module attributes {stable_mosaic.version = 11 : i64} {
  func.func @_asym_conv_kernel(%arg0: i32, %arg1: memref<1x4x256xf32, #tpu.memory_space<vmem>>, %arg2: memref<80xf32, #tpu.memory_space<smem>>, %arg3: memref<4xf32, #tpu.memory_space<smem>>, %arg4: memref<1xf32, #tpu.memory_space<smem>>, %arg5: memref<1x4x256xf32, #tpu.memory_space<vmem>>) attributes {dimension_semantics = [#tpu.dimension_semantics<parallel>], iteration_bounds = array<i64: 2>, scalar_prefetch = 0 : i64, scratch_operands = 0 : i64, tpu.core_type = #tpu.core_type<tc>, window_params = [{transform_indices = @transform_0, window_bounds = array<i64: 1, 4, 256>}, {transform_indices = @transform_1, window_bounds = array<i64: 80>}, {transform_indices = @transform_2, window_bounds = array<i64: 4>}, {transform_indices = @transform_3, window_bounds = array<i64: 1>}, {transform_indices = @transform_4, window_bounds = array<i64: 1, 4, 256>}]} {
    %c0 = arith.constant 0 : index
    %0 = memref.load %arg2[%c0] : memref<80xf32, #tpu.memory_space<smem>>
    %c1 = arith.constant 1 : index
    %1 = memref.load %arg2[%c1] : memref<80xf32, #tpu.memory_space<smem>>
    %c2 = arith.constant 2 : index
    %2 = memref.load %arg2[%c2] : memref<80xf32, #tpu.memory_space<smem>>
    %c3 = arith.constant 3 : index
    %3 = memref.load %arg2[%c3] : memref<80xf32, #tpu.memory_space<smem>>
    %c4 = arith.constant 4 : index
    %4 = memref.load %arg2[%c4] : memref<80xf32, #tpu.memory_space<smem>>
    %c5 = arith.constant 5 : index
    %5 = memref.load %arg2[%c5] : memref<80xf32, #tpu.memory_space<smem>>
    %c6 = arith.constant 6 : index
    %6 = memref.load %arg2[%c6] : memref<80xf32, #tpu.memory_space<smem>>
    %c7 = arith.constant 7 : index
    %7 = memref.load %arg2[%c7] : memref<80xf32, #tpu.memory_space<smem>>
    %c8 = arith.constant 8 : index
    %8 = memref.load %arg2[%c8] : memref<80xf32, #tpu.memory_space<smem>>
    %c9 = arith.constant 9 : index
    %9 = memref.load %arg2[%c9] : memref<80xf32, #tpu.memory_space<smem>>
    %c10 = arith.constant 10 : index
    %10 = memref.load %arg2[%c10] : memref<80xf32, #tpu.memory_space<smem>>
    %c11 = arith.constant 11 : index
    %11 = memref.load %arg2[%c11] : memref<80xf32, #tpu.memory_space<smem>>
    %c12 = arith.constant 12 : index
    %12 = memref.load %arg2[%c12] : memref<80xf32, #tpu.memory_space<smem>>
    %c13 = arith.constant 13 : index
    %13 = memref.load %arg2[%c13] : memref<80xf32, #tpu.memory_space<smem>>
    %c14 = arith.constant 14 : index
    %14 = memref.load %arg2[%c14] : memref<80xf32, #tpu.memory_space<smem>>
    %c15 = arith.constant 15 : index
    %15 = memref.load %arg2[%c15] : memref<80xf32, #tpu.memory_space<smem>>
    %c16 = arith.constant 16 : index
    %16 = memref.load %arg2[%c16] : memref<80xf32, #tpu.memory_space<smem>>
    %c17 = arith.constant 17 : index
    %17 = memref.load %arg2[%c17] : memref<80xf32, #tpu.memory_space<smem>>
    %c18 = arith.constant 18 : index
    %18 = memref.load %arg2[%c18] : memref<80xf32, #tpu.memory_space<smem>>
    %c19 = arith.constant 19 : index
    %19 = memref.load %arg2[%c19] : memref<80xf32, #tpu.memory_space<smem>>
    %c20 = arith.constant 20 : index
    %20 = memref.load %arg2[%c20] : memref<80xf32, #tpu.memory_space<smem>>
    %c21 = arith.constant 21 : index
    %21 = memref.load %arg2[%c21] : memref<80xf32, #tpu.memory_space<smem>>
    %c22 = arith.constant 22 : index
    %22 = memref.load %arg2[%c22] : memref<80xf32, #tpu.memory_space<smem>>
    %c23 = arith.constant 23 : index
    %23 = memref.load %arg2[%c23] : memref<80xf32, #tpu.memory_space<smem>>
    %c24 = arith.constant 24 : index
    %24 = memref.load %arg2[%c24] : memref<80xf32, #tpu.memory_space<smem>>
    %c25 = arith.constant 25 : index
    %25 = memref.load %arg2[%c25] : memref<80xf32, #tpu.memory_space<smem>>
    %c26 = arith.constant 26 : index
    %26 = memref.load %arg2[%c26] : memref<80xf32, #tpu.memory_space<smem>>
    %c27 = arith.constant 27 : index
    %27 = memref.load %arg2[%c27] : memref<80xf32, #tpu.memory_space<smem>>
    %c28 = arith.constant 28 : index
    %28 = memref.load %arg2[%c28] : memref<80xf32, #tpu.memory_space<smem>>
    %c29 = arith.constant 29 : index
    %29 = memref.load %arg2[%c29] : memref<80xf32, #tpu.memory_space<smem>>
    %c30 = arith.constant 30 : index
    %30 = memref.load %arg2[%c30] : memref<80xf32, #tpu.memory_space<smem>>
    %c31 = arith.constant 31 : index
    %31 = memref.load %arg2[%c31] : memref<80xf32, #tpu.memory_space<smem>>
    %c32 = arith.constant 32 : index
    %32 = memref.load %arg2[%c32] : memref<80xf32, #tpu.memory_space<smem>>
    %c33 = arith.constant 33 : index
    %33 = memref.load %arg2[%c33] : memref<80xf32, #tpu.memory_space<smem>>
    %c34 = arith.constant 34 : index
    %34 = memref.load %arg2[%c34] : memref<80xf32, #tpu.memory_space<smem>>
    %c35 = arith.constant 35 : index
    %35 = memref.load %arg2[%c35] : memref<80xf32, #tpu.memory_space<smem>>
    %c36 = arith.constant 36 : index
    %36 = memref.load %arg2[%c36] : memref<80xf32, #tpu.memory_space<smem>>
    %c37 = arith.constant 37 : index
    %37 = memref.load %arg2[%c37] : memref<80xf32, #tpu.memory_space<smem>>
    %c38 = arith.constant 38 : index
    %38 = memref.load %arg2[%c38] : memref<80xf32, #tpu.memory_space<smem>>
    %c39 = arith.constant 39 : index
    %39 = memref.load %arg2[%c39] : memref<80xf32, #tpu.memory_space<smem>>
    %c40 = arith.constant 40 : index
    %40 = memref.load %arg2[%c40] : memref<80xf32, #tpu.memory_space<smem>>
    %c41 = arith.constant 41 : index
    %41 = memref.load %arg2[%c41] : memref<80xf32, #tpu.memory_space<smem>>
    %c42 = arith.constant 42 : index
    %42 = memref.load %arg2[%c42] : memref<80xf32, #tpu.memory_space<smem>>
    %c43 = arith.constant 43 : index
    %43 = memref.load %arg2[%c43] : memref<80xf32, #tpu.memory_space<smem>>
    %c44 = arith.constant 44 : index
    %44 = memref.load %arg2[%c44] : memref<80xf32, #tpu.memory_space<smem>>
    %c45 = arith.constant 45 : index
    %45 = memref.load %arg2[%c45] : memref<80xf32, #tpu.memory_space<smem>>
    %c46 = arith.constant 46 : index
    %46 = memref.load %arg2[%c46] : memref<80xf32, #tpu.memory_space<smem>>
    %c47 = arith.constant 47 : index
    %47 = memref.load %arg2[%c47] : memref<80xf32, #tpu.memory_space<smem>>
    %c48 = arith.constant 48 : index
    %48 = memref.load %arg2[%c48] : memref<80xf32, #tpu.memory_space<smem>>
    %c49 = arith.constant 49 : index
    %49 = memref.load %arg2[%c49] : memref<80xf32, #tpu.memory_space<smem>>
    %c50 = arith.constant 50 : index
    %50 = memref.load %arg2[%c50] : memref<80xf32, #tpu.memory_space<smem>>
    %c51 = arith.constant 51 : index
    %51 = memref.load %arg2[%c51] : memref<80xf32, #tpu.memory_space<smem>>
    %c52 = arith.constant 52 : index
    %52 = memref.load %arg2[%c52] : memref<80xf32, #tpu.memory_space<smem>>
    %c53 = arith.constant 53 : index
    %53 = memref.load %arg2[%c53] : memref<80xf32, #tpu.memory_space<smem>>
    %c54 = arith.constant 54 : index
    %54 = memref.load %arg2[%c54] : memref<80xf32, #tpu.memory_space<smem>>
    %c55 = arith.constant 55 : index
    %55 = memref.load %arg2[%c55] : memref<80xf32, #tpu.memory_space<smem>>
    %c56 = arith.constant 56 : index
    %56 = memref.load %arg2[%c56] : memref<80xf32, #tpu.memory_space<smem>>
    %c57 = arith.constant 57 : index
    %57 = memref.load %arg2[%c57] : memref<80xf32, #tpu.memory_space<smem>>
    %c58 = arith.constant 58 : index
    %58 = memref.load %arg2[%c58] : memref<80xf32, #tpu.memory_space<smem>>
    %c59 = arith.constant 59 : index
    %59 = memref.load %arg2[%c59] : memref<80xf32, #tpu.memory_space<smem>>
    %c60 = arith.constant 60 : index
    %60 = memref.load %arg2[%c60] : memref<80xf32, #tpu.memory_space<smem>>
    %c61 = arith.constant 61 : index
    %61 = memref.load %arg2[%c61] : memref<80xf32, #tpu.memory_space<smem>>
    %c62 = arith.constant 62 : index
    %62 = memref.load %arg2[%c62] : memref<80xf32, #tpu.memory_space<smem>>
    %c63 = arith.constant 63 : index
    %63 = memref.load %arg2[%c63] : memref<80xf32, #tpu.memory_space<smem>>
    %c64 = arith.constant 64 : index
    %64 = memref.load %arg2[%c64] : memref<80xf32, #tpu.memory_space<smem>>
    %c65 = arith.constant 65 : index
    %65 = memref.load %arg2[%c65] : memref<80xf32, #tpu.memory_space<smem>>
    %c66 = arith.constant 66 : index
    %66 = memref.load %arg2[%c66] : memref<80xf32, #tpu.memory_space<smem>>
    %c67 = arith.constant 67 : index
    %67 = memref.load %arg2[%c67] : memref<80xf32, #tpu.memory_space<smem>>
    %c68 = arith.constant 68 : index
    %68 = memref.load %arg2[%c68] : memref<80xf32, #tpu.memory_space<smem>>
    %c69 = arith.constant 69 : index
    %69 = memref.load %arg2[%c69] : memref<80xf32, #tpu.memory_space<smem>>
    %c70 = arith.constant 70 : index
    %70 = memref.load %arg2[%c70] : memref<80xf32, #tpu.memory_space<smem>>
    %c71 = arith.constant 71 : index
    %71 = memref.load %arg2[%c71] : memref<80xf32, #tpu.memory_space<smem>>
    %c72 = arith.constant 72 : index
    %72 = memref.load %arg2[%c72] : memref<80xf32, #tpu.memory_space<smem>>
    %c73 = arith.constant 73 : index
    %73 = memref.load %arg2[%c73] : memref<80xf32, #tpu.memory_space<smem>>
    %c74 = arith.constant 74 : index
    %74 = memref.load %arg2[%c74] : memref<80xf32, #tpu.memory_space<smem>>
    %c75 = arith.constant 75 : index
    %75 = memref.load %arg2[%c75] : memref<80xf32, #tpu.memory_space<smem>>
    %c76 = arith.constant 76 : index
    %76 = memref.load %arg2[%c76] : memref<80xf32, #tpu.memory_space<smem>>
    %c77 = arith.constant 77 : index
    %77 = memref.load %arg2[%c77] : memref<80xf32, #tpu.memory_space<smem>>
    %c78 = arith.constant 78 : index
    %78 = memref.load %arg2[%c78] : memref<80xf32, #tpu.memory_space<smem>>
    %c79 = arith.constant 79 : index
    %79 = memref.load %arg2[%c79] : memref<80xf32, #tpu.memory_space<smem>>
    %c0_0 = arith.constant 0 : index
    %80 = memref.load %arg3[%c0_0] : memref<4xf32, #tpu.memory_space<smem>>
    %c1_1 = arith.constant 1 : index
    %81 = memref.load %arg3[%c1_1] : memref<4xf32, #tpu.memory_space<smem>>
    %c2_2 = arith.constant 2 : index
    %82 = memref.load %arg3[%c2_2] : memref<4xf32, #tpu.memory_space<smem>>
    %c3_3 = arith.constant 3 : index
    %83 = memref.load %arg3[%c3_3] : memref<4xf32, #tpu.memory_space<smem>>
    %c0_4 = arith.constant 0 : index
    %84 = memref.load %arg4[%c0_4] : memref<1xf32, #tpu.memory_space<smem>>
    %85 = tpu.iota {dimensions = array<i32: 1>} : vector<1x256xi32>
    %c15_i32 = arith.constant 15 : i32
    %86 = vector.broadcast %c15_i32 : i32 to vector<1x256xi32>
    %87 = arith.andi %85, %86 : vector<1x256xi32>
    %c16_i32 = arith.constant 16 : i32
    %88 = vector.broadcast %c16_i32 : i32 to vector<1x256xi32>
    %89 = arith.cmpi sge, %85, %88 : vector<1x256xi32>
    %90 = arith.extui %89 : vector<1x256xi1> to vector<1x256xi32>
    %91 = arith.sitofp %90 : vector<1x256xi32> to vector<1x256xf32>
    %c240_i32 = arith.constant 240 : i32
    %92 = vector.broadcast %c240_i32 : i32 to vector<1x256xi32>
    %93 = arith.cmpi slt, %85, %92 : vector<1x256xi32>
    %94 = arith.extui %93 : vector<1x256xi1> to vector<1x256xi32>
    %95 = arith.sitofp %94 : vector<1x256xi32> to vector<1x256xf32>
    %c0_i32 = arith.constant 0 : i32
    %96 = vector.broadcast %c0_i32 : i32 to vector<1x256xi32>
    %97 = arith.cmpi ne, %87, %96 : vector<1x256xi32>
    %98 = arith.extui %97 : vector<1x256xi1> to vector<1x256xi32>
    %99 = arith.sitofp %98 : vector<1x256xi32> to vector<1x256xf32>
    %c15_i32_5 = arith.constant 15 : i32
    %100 = vector.broadcast %c15_i32_5 : i32 to vector<1x256xi32>
    %101 = arith.cmpi ne, %87, %100 : vector<1x256xi32>
    %102 = arith.extui %101 : vector<1x256xi1> to vector<1x256xi32>
    %103 = arith.sitofp %102 : vector<1x256xi32> to vector<1x256xf32>
    %c0_6 = arith.constant 0 : index
    %c0_7 = arith.constant 0 : index
    %c0_8 = arith.constant 0 : index
    %104 = vector.load %arg1[%c0_6, %c0_7, %c0_8] : memref<1x4x256xf32, #tpu.memory_space<vmem>>, vector<1x4x256xf32>
    %105 = vector.shape_cast %104 : vector<1x4x256xf32> to vector<4x256xf32>
    %c16_i32_9 = arith.constant 16 : i32
    %106 = tpu.dynamic_rotate %105 by %c16_i32_9 dim 1 : vector<4x256xf32>, i32 -> vector<4x256xf32>
    %107 = vector.broadcast %91 : vector<1x256xf32> to vector<4x256xf32>
    %108 = arith.mulf %106, %107 : vector<4x256xf32>
    %c240_i32_10 = arith.constant 240 : i32
    %109 = tpu.dynamic_rotate %105 by %c240_i32_10 dim 1 : vector<4x256xf32>, i32 -> vector<4x256xf32>
    %110 = vector.broadcast %95 : vector<1x256xf32> to vector<4x256xf32>
    %111 = arith.mulf %109, %110 : vector<4x256xf32>
    %c1_i32 = arith.constant 1 : i32
    %112 = tpu.dynamic_rotate %105 by %c1_i32 dim 1 : vector<4x256xf32>, i32 -> vector<4x256xf32>
    %113 = vector.broadcast %99 : vector<1x256xf32> to vector<4x256xf32>
    %114 = arith.mulf %112, %113 : vector<4x256xf32>
    %c255_i32 = arith.constant 255 : i32
    %115 = tpu.dynamic_rotate %105 by %c255_i32 dim 1 : vector<4x256xf32>, i32 -> vector<4x256xf32>
    %116 = vector.broadcast %103 : vector<1x256xf32> to vector<4x256xf32>
    %117 = arith.mulf %115, %116 : vector<4x256xf32>
    %118 = vector.extract_strided_slice %105 {offsets = [0, 0], sizes = [1, 256], strides = [1, 1]} : vector<4x256xf32> to vector<1x256xf32>
    %119 = vector.broadcast %64 : f32 to vector<1x256xf32>
    %120 = arith.mulf %119, %118 : vector<1x256xf32>
    %121 = vector.extract_strided_slice %105 {offsets = [1, 0], sizes = [1, 256], strides = [1, 1]} : vector<4x256xf32> to vector<1x256xf32>
    %122 = vector.broadcast %65 : f32 to vector<1x256xf32>
    %123 = arith.mulf %122, %121 : vector<1x256xf32>
    %124 = arith.addf %120, %123 : vector<1x256xf32>
    %125 = vector.extract_strided_slice %105 {offsets = [2, 0], sizes = [1, 256], strides = [1, 1]} : vector<4x256xf32> to vector<1x256xf32>
    %126 = vector.broadcast %66 : f32 to vector<1x256xf32>
    %127 = arith.mulf %126, %125 : vector<1x256xf32>
    %128 = arith.addf %124, %127 : vector<1x256xf32>
    %129 = vector.extract_strided_slice %105 {offsets = [3, 0], sizes = [1, 256], strides = [1, 1]} : vector<4x256xf32> to vector<1x256xf32>
    %130 = vector.broadcast %67 : f32 to vector<1x256xf32>
    %131 = arith.mulf %130, %129 : vector<1x256xf32>
    %132 = arith.addf %128, %131 : vector<1x256xf32>
    %133 = vector.extract_strided_slice %108 {offsets = [0, 0], sizes = [1, 256], strides = [1, 1]} : vector<4x256xf32> to vector<1x256xf32>
    %134 = vector.broadcast %0 : f32 to vector<1x256xf32>
    %135 = arith.mulf %134, %133 : vector<1x256xf32>
    %136 = arith.addf %132, %135 : vector<1x256xf32>
    %137 = vector.extract_strided_slice %108 {offsets = [1, 0], sizes = [1, 256], strides = [1, 1]} : vector<4x256xf32> to vector<1x256xf32>
    %138 = vector.broadcast %1 : f32 to vector<1x256xf32>
    %139 = arith.mulf %138, %137 : vector<1x256xf32>
    %140 = arith.addf %136, %139 : vector<1x256xf32>
    %141 = vector.extract_strided_slice %108 {offsets = [2, 0], sizes = [1, 256], strides = [1, 1]} : vector<4x256xf32> to vector<1x256xf32>
    %142 = vector.broadcast %2 : f32 to vector<1x256xf32>
    %143 = arith.mulf %142, %141 : vector<1x256xf32>
    %144 = arith.addf %140, %143 : vector<1x256xf32>
    %145 = vector.extract_strided_slice %108 {offsets = [3, 0], sizes = [1, 256], strides = [1, 1]} : vector<4x256xf32> to vector<1x256xf32>
    %146 = vector.broadcast %3 : f32 to vector<1x256xf32>
    %147 = arith.mulf %146, %145 : vector<1x256xf32>
    %148 = arith.addf %144, %147 : vector<1x256xf32>
    %149 = vector.extract_strided_slice %111 {offsets = [0, 0], sizes = [1, 256], strides = [1, 1]} : vector<4x256xf32> to vector<1x256xf32>
    %150 = vector.broadcast %16 : f32 to vector<1x256xf32>
    %151 = arith.mulf %150, %149 : vector<1x256xf32>
    %152 = arith.addf %148, %151 : vector<1x256xf32>
    %153 = vector.extract_strided_slice %111 {offsets = [1, 0], sizes = [1, 256], strides = [1, 1]} : vector<4x256xf32> to vector<1x256xf32>
    %154 = vector.broadcast %17 : f32 to vector<1x256xf32>
    %155 = arith.mulf %154, %153 : vector<1x256xf32>
    %156 = arith.addf %152, %155 : vector<1x256xf32>
    %157 = vector.extract_strided_slice %111 {offsets = [2, 0], sizes = [1, 256], strides = [1, 1]} : vector<4x256xf32> to vector<1x256xf32>
    %158 = vector.broadcast %18 : f32 to vector<1x256xf32>
    %159 = arith.mulf %158, %157 : vector<1x256xf32>
    %160 = arith.addf %156, %159 : vector<1x256xf32>
    %161 = vector.extract_strided_slice %111 {offsets = [3, 0], sizes = [1, 256], strides = [1, 1]} : vector<4x256xf32> to vector<1x256xf32>
    %162 = vector.broadcast %19 : f32 to vector<1x256xf32>
    %163 = arith.mulf %162, %161 : vector<1x256xf32>
    %164 = arith.addf %160, %163 : vector<1x256xf32>
    %165 = vector.extract_strided_slice %114 {offsets = [0, 0], sizes = [1, 256], strides = [1, 1]} : vector<4x256xf32> to vector<1x256xf32>
    %166 = vector.broadcast %32 : f32 to vector<1x256xf32>
    %167 = arith.mulf %166, %165 : vector<1x256xf32>
    %168 = arith.addf %164, %167 : vector<1x256xf32>
    %169 = vector.extract_strided_slice %114 {offsets = [1, 0], sizes = [1, 256], strides = [1, 1]} : vector<4x256xf32> to vector<1x256xf32>
    %170 = vector.broadcast %33 : f32 to vector<1x256xf32>
    %171 = arith.mulf %170, %169 : vector<1x256xf32>
    %172 = arith.addf %168, %171 : vector<1x256xf32>
    %173 = vector.extract_strided_slice %114 {offsets = [2, 0], sizes = [1, 256], strides = [1, 1]} : vector<4x256xf32> to vector<1x256xf32>
    %174 = vector.broadcast %34 : f32 to vector<1x256xf32>
    %175 = arith.mulf %174, %173 : vector<1x256xf32>
    %176 = arith.addf %172, %175 : vector<1x256xf32>
    %177 = vector.extract_strided_slice %114 {offsets = [3, 0], sizes = [1, 256], strides = [1, 1]} : vector<4x256xf32> to vector<1x256xf32>
    %178 = vector.broadcast %35 : f32 to vector<1x256xf32>
    %179 = arith.mulf %178, %177 : vector<1x256xf32>
    %180 = arith.addf %176, %179 : vector<1x256xf32>
    %181 = vector.extract_strided_slice %117 {offsets = [0, 0], sizes = [1, 256], strides = [1, 1]} : vector<4x256xf32> to vector<1x256xf32>
    %182 = vector.broadcast %48 : f32 to vector<1x256xf32>
    %183 = arith.mulf %182, %181 : vector<1x256xf32>
    %184 = arith.addf %180, %183 : vector<1x256xf32>
    %185 = vector.extract_strided_slice %117 {offsets = [1, 0], sizes = [1, 256], strides = [1, 1]} : vector<4x256xf32> to vector<1x256xf32>
    %186 = vector.broadcast %49 : f32 to vector<1x256xf32>
    %187 = arith.mulf %186, %185 : vector<1x256xf32>
    %188 = arith.addf %184, %187 : vector<1x256xf32>
    %189 = vector.extract_strided_slice %117 {offsets = [2, 0], sizes = [1, 256], strides = [1, 1]} : vector<4x256xf32> to vector<1x256xf32>
    %190 = vector.broadcast %50 : f32 to vector<1x256xf32>
    %191 = arith.mulf %190, %189 : vector<1x256xf32>
    %192 = arith.addf %188, %191 : vector<1x256xf32>
    %193 = vector.extract_strided_slice %117 {offsets = [3, 0], sizes = [1, 256], strides = [1, 1]} : vector<4x256xf32> to vector<1x256xf32>
    %194 = vector.broadcast %51 : f32 to vector<1x256xf32>
    %195 = arith.mulf %194, %193 : vector<1x256xf32>
    %196 = arith.addf %192, %195 : vector<1x256xf32>
    %197 = vector.broadcast %80 : f32 to vector<1x256xf32>
    %198 = arith.addf %196, %197 : vector<1x256xf32>
    %199 = vector.extract_strided_slice %105 {offsets = [0, 0], sizes = [1, 256], strides = [1, 1]} : vector<4x256xf32> to vector<1x256xf32>
    %200 = vector.broadcast %68 : f32 to vector<1x256xf32>
    %201 = arith.mulf %200, %199 : vector<1x256xf32>
    %202 = vector.extract_strided_slice %105 {offsets = [1, 0], sizes = [1, 256], strides = [1, 1]} : vector<4x256xf32> to vector<1x256xf32>
    %203 = vector.broadcast %69 : f32 to vector<1x256xf32>
    %204 = arith.mulf %203, %202 : vector<1x256xf32>
    %205 = arith.addf %201, %204 : vector<1x256xf32>
    %206 = vector.extract_strided_slice %105 {offsets = [2, 0], sizes = [1, 256], strides = [1, 1]} : vector<4x256xf32> to vector<1x256xf32>
    %207 = vector.broadcast %70 : f32 to vector<1x256xf32>
    %208 = arith.mulf %207, %206 : vector<1x256xf32>
    %209 = arith.addf %205, %208 : vector<1x256xf32>
    %210 = vector.extract_strided_slice %105 {offsets = [3, 0], sizes = [1, 256], strides = [1, 1]} : vector<4x256xf32> to vector<1x256xf32>
    %211 = vector.broadcast %71 : f32 to vector<1x256xf32>
    %212 = arith.mulf %211, %210 : vector<1x256xf32>
    %213 = arith.addf %209, %212 : vector<1x256xf32>
    %214 = vector.extract_strided_slice %108 {offsets = [0, 0], sizes = [1, 256], strides = [1, 1]} : vector<4x256xf32> to vector<1x256xf32>
    %215 = vector.broadcast %4 : f32 to vector<1x256xf32>
    %216 = arith.mulf %215, %214 : vector<1x256xf32>
    %217 = arith.addf %213, %216 : vector<1x256xf32>
    %218 = vector.extract_strided_slice %108 {offsets = [1, 0], sizes = [1, 256], strides = [1, 1]} : vector<4x256xf32> to vector<1x256xf32>
    %219 = vector.broadcast %5 : f32 to vector<1x256xf32>
    %220 = arith.mulf %219, %218 : vector<1x256xf32>
    %221 = arith.addf %217, %220 : vector<1x256xf32>
    %222 = vector.extract_strided_slice %108 {offsets = [2, 0], sizes = [1, 256], strides = [1, 1]} : vector<4x256xf32> to vector<1x256xf32>
    %223 = vector.broadcast %6 : f32 to vector<1x256xf32>
    %224 = arith.mulf %223, %222 : vector<1x256xf32>
    %225 = arith.addf %221, %224 : vector<1x256xf32>
    %226 = vector.extract_strided_slice %108 {offsets = [3, 0], sizes = [1, 256], strides = [1, 1]} : vector<4x256xf32> to vector<1x256xf32>
    %227 = vector.broadcast %7 : f32 to vector<1x256xf32>
    %228 = arith.mulf %227, %226 : vector<1x256xf32>
    %229 = arith.addf %225, %228 : vector<1x256xf32>
    %230 = vector.extract_strided_slice %111 {offsets = [0, 0], sizes = [1, 256], strides = [1, 1]} : vector<4x256xf32> to vector<1x256xf32>
    %231 = vector.broadcast %20 : f32 to vector<1x256xf32>
    %232 = arith.mulf %231, %230 : vector<1x256xf32>
    %233 = arith.addf %229, %232 : vector<1x256xf32>
    %234 = vector.extract_strided_slice %111 {offsets = [1, 0], sizes = [1, 256], strides = [1, 1]} : vector<4x256xf32> to vector<1x256xf32>
    %235 = vector.broadcast %21 : f32 to vector<1x256xf32>
    %236 = arith.mulf %235, %234 : vector<1x256xf32>
    %237 = arith.addf %233, %236 : vector<1x256xf32>
    %238 = vector.extract_strided_slice %111 {offsets = [2, 0], sizes = [1, 256], strides = [1, 1]} : vector<4x256xf32> to vector<1x256xf32>
    %239 = vector.broadcast %22 : f32 to vector<1x256xf32>
    %240 = arith.mulf %239, %238 : vector<1x256xf32>
    %241 = arith.addf %237, %240 : vector<1x256xf32>
    %242 = vector.extract_strided_slice %111 {offsets = [3, 0], sizes = [1, 256], strides = [1, 1]} : vector<4x256xf32> to vector<1x256xf32>
    %243 = vector.broadcast %23 : f32 to vector<1x256xf32>
    %244 = arith.mulf %243, %242 : vector<1x256xf32>
    %245 = arith.addf %241, %244 : vector<1x256xf32>
    %246 = vector.extract_strided_slice %114 {offsets = [0, 0], sizes = [1, 256], strides = [1, 1]} : vector<4x256xf32> to vector<1x256xf32>
    %247 = vector.broadcast %36 : f32 to vector<1x256xf32>
    %248 = arith.mulf %247, %246 : vector<1x256xf32>
    %249 = arith.addf %245, %248 : vector<1x256xf32>
    %250 = vector.extract_strided_slice %114 {offsets = [1, 0], sizes = [1, 256], strides = [1, 1]} : vector<4x256xf32> to vector<1x256xf32>
    %251 = vector.broadcast %37 : f32 to vector<1x256xf32>
    %252 = arith.mulf %251, %250 : vector<1x256xf32>
    %253 = arith.addf %249, %252 : vector<1x256xf32>
    %254 = vector.extract_strided_slice %114 {offsets = [2, 0], sizes = [1, 256], strides = [1, 1]} : vector<4x256xf32> to vector<1x256xf32>
    %255 = vector.broadcast %38 : f32 to vector<1x256xf32>
    %256 = arith.mulf %255, %254 : vector<1x256xf32>
    %257 = arith.addf %253, %256 : vector<1x256xf32>
    %258 = vector.extract_strided_slice %114 {offsets = [3, 0], sizes = [1, 256], strides = [1, 1]} : vector<4x256xf32> to vector<1x256xf32>
    %259 = vector.broadcast %39 : f32 to vector<1x256xf32>
    %260 = arith.mulf %259, %258 : vector<1x256xf32>
    %261 = arith.addf %257, %260 : vector<1x256xf32>
    %262 = vector.extract_strided_slice %117 {offsets = [0, 0], sizes = [1, 256], strides = [1, 1]} : vector<4x256xf32> to vector<1x256xf32>
    %263 = vector.broadcast %52 : f32 to vector<1x256xf32>
    %264 = arith.mulf %263, %262 : vector<1x256xf32>
    %265 = arith.addf %261, %264 : vector<1x256xf32>
    %266 = vector.extract_strided_slice %117 {offsets = [1, 0], sizes = [1, 256], strides = [1, 1]} : vector<4x256xf32> to vector<1x256xf32>
    %267 = vector.broadcast %53 : f32 to vector<1x256xf32>
    %268 = arith.mulf %267, %266 : vector<1x256xf32>
    %269 = arith.addf %265, %268 : vector<1x256xf32>
    %270 = vector.extract_strided_slice %117 {offsets = [2, 0], sizes = [1, 256], strides = [1, 1]} : vector<4x256xf32> to vector<1x256xf32>
    %271 = vector.broadcast %54 : f32 to vector<1x256xf32>
    %272 = arith.mulf %271, %270 : vector<1x256xf32>
    %273 = arith.addf %269, %272 : vector<1x256xf32>
    %274 = vector.extract_strided_slice %117 {offsets = [3, 0], sizes = [1, 256], strides = [1, 1]} : vector<4x256xf32> to vector<1x256xf32>
    %275 = vector.broadcast %55 : f32 to vector<1x256xf32>
    %276 = arith.mulf %275, %274 : vector<1x256xf32>
    %277 = arith.addf %273, %276 : vector<1x256xf32>
    %278 = vector.broadcast %81 : f32 to vector<1x256xf32>
    %279 = arith.addf %277, %278 : vector<1x256xf32>
    %280 = vector.extract_strided_slice %105 {offsets = [0, 0], sizes = [1, 256], strides = [1, 1]} : vector<4x256xf32> to vector<1x256xf32>
    %281 = vector.broadcast %72 : f32 to vector<1x256xf32>
    %282 = arith.mulf %281, %280 : vector<1x256xf32>
    %283 = vector.extract_strided_slice %105 {offsets = [1, 0], sizes = [1, 256], strides = [1, 1]} : vector<4x256xf32> to vector<1x256xf32>
    %284 = vector.broadcast %73 : f32 to vector<1x256xf32>
    %285 = arith.mulf %284, %283 : vector<1x256xf32>
    %286 = arith.addf %282, %285 : vector<1x256xf32>
    %287 = vector.extract_strided_slice %105 {offsets = [2, 0], sizes = [1, 256], strides = [1, 1]} : vector<4x256xf32> to vector<1x256xf32>
    %288 = vector.broadcast %74 : f32 to vector<1x256xf32>
    %289 = arith.mulf %288, %287 : vector<1x256xf32>
    %290 = arith.addf %286, %289 : vector<1x256xf32>
    %291 = vector.extract_strided_slice %105 {offsets = [3, 0], sizes = [1, 256], strides = [1, 1]} : vector<4x256xf32> to vector<1x256xf32>
    %292 = vector.broadcast %75 : f32 to vector<1x256xf32>
    %293 = arith.mulf %292, %291 : vector<1x256xf32>
    %294 = arith.addf %290, %293 : vector<1x256xf32>
    %295 = vector.extract_strided_slice %108 {offsets = [0, 0], sizes = [1, 256], strides = [1, 1]} : vector<4x256xf32> to vector<1x256xf32>
    %296 = vector.broadcast %8 : f32 to vector<1x256xf32>
    %297 = arith.mulf %296, %295 : vector<1x256xf32>
    %298 = arith.addf %294, %297 : vector<1x256xf32>
    %299 = vector.extract_strided_slice %108 {offsets = [1, 0], sizes = [1, 256], strides = [1, 1]} : vector<4x256xf32> to vector<1x256xf32>
    %300 = vector.broadcast %9 : f32 to vector<1x256xf32>
    %301 = arith.mulf %300, %299 : vector<1x256xf32>
    %302 = arith.addf %298, %301 : vector<1x256xf32>
    %303 = vector.extract_strided_slice %108 {offsets = [2, 0], sizes = [1, 256], strides = [1, 1]} : vector<4x256xf32> to vector<1x256xf32>
    %304 = vector.broadcast %10 : f32 to vector<1x256xf32>
    %305 = arith.mulf %304, %303 : vector<1x256xf32>
    %306 = arith.addf %302, %305 : vector<1x256xf32>
    %307 = vector.extract_strided_slice %108 {offsets = [3, 0], sizes = [1, 256], strides = [1, 1]} : vector<4x256xf32> to vector<1x256xf32>
    %308 = vector.broadcast %11 : f32 to vector<1x256xf32>
    %309 = arith.mulf %308, %307 : vector<1x256xf32>
    %310 = arith.addf %306, %309 : vector<1x256xf32>
    %311 = vector.extract_strided_slice %111 {offsets = [0, 0], sizes = [1, 256], strides = [1, 1]} : vector<4x256xf32> to vector<1x256xf32>
    %312 = vector.broadcast %24 : f32 to vector<1x256xf32>
    %313 = arith.mulf %312, %311 : vector<1x256xf32>
    %314 = arith.addf %310, %313 : vector<1x256xf32>
    %315 = vector.extract_strided_slice %111 {offsets = [1, 0], sizes = [1, 256], strides = [1, 1]} : vector<4x256xf32> to vector<1x256xf32>
    %316 = vector.broadcast %25 : f32 to vector<1x256xf32>
    %317 = arith.mulf %316, %315 : vector<1x256xf32>
    %318 = arith.addf %314, %317 : vector<1x256xf32>
    %319 = vector.extract_strided_slice %111 {offsets = [2, 0], sizes = [1, 256], strides = [1, 1]} : vector<4x256xf32> to vector<1x256xf32>
    %320 = vector.broadcast %26 : f32 to vector<1x256xf32>
    %321 = arith.mulf %320, %319 : vector<1x256xf32>
    %322 = arith.addf %318, %321 : vector<1x256xf32>
    %323 = vector.extract_strided_slice %111 {offsets = [3, 0], sizes = [1, 256], strides = [1, 1]} : vector<4x256xf32> to vector<1x256xf32>
    %324 = vector.broadcast %27 : f32 to vector<1x256xf32>
    %325 = arith.mulf %324, %323 : vector<1x256xf32>
    %326 = arith.addf %322, %325 : vector<1x256xf32>
    %327 = vector.extract_strided_slice %114 {offsets = [0, 0], sizes = [1, 256], strides = [1, 1]} : vector<4x256xf32> to vector<1x256xf32>
    %328 = vector.broadcast %40 : f32 to vector<1x256xf32>
    %329 = arith.mulf %328, %327 : vector<1x256xf32>
    %330 = arith.addf %326, %329 : vector<1x256xf32>
    %331 = vector.extract_strided_slice %114 {offsets = [1, 0], sizes = [1, 256], strides = [1, 1]} : vector<4x256xf32> to vector<1x256xf32>
    %332 = vector.broadcast %41 : f32 to vector<1x256xf32>
    %333 = arith.mulf %332, %331 : vector<1x256xf32>
    %334 = arith.addf %330, %333 : vector<1x256xf32>
    %335 = vector.extract_strided_slice %114 {offsets = [2, 0], sizes = [1, 256], strides = [1, 1]} : vector<4x256xf32> to vector<1x256xf32>
    %336 = vector.broadcast %42 : f32 to vector<1x256xf32>
    %337 = arith.mulf %336, %335 : vector<1x256xf32>
    %338 = arith.addf %334, %337 : vector<1x256xf32>
    %339 = vector.extract_strided_slice %114 {offsets = [3, 0], sizes = [1, 256], strides = [1, 1]} : vector<4x256xf32> to vector<1x256xf32>
    %340 = vector.broadcast %43 : f32 to vector<1x256xf32>
    %341 = arith.mulf %340, %339 : vector<1x256xf32>
    %342 = arith.addf %338, %341 : vector<1x256xf32>
    %343 = vector.extract_strided_slice %117 {offsets = [0, 0], sizes = [1, 256], strides = [1, 1]} : vector<4x256xf32> to vector<1x256xf32>
    %344 = vector.broadcast %56 : f32 to vector<1x256xf32>
    %345 = arith.mulf %344, %343 : vector<1x256xf32>
    %346 = arith.addf %342, %345 : vector<1x256xf32>
    %347 = vector.extract_strided_slice %117 {offsets = [1, 0], sizes = [1, 256], strides = [1, 1]} : vector<4x256xf32> to vector<1x256xf32>
    %348 = vector.broadcast %57 : f32 to vector<1x256xf32>
    %349 = arith.mulf %348, %347 : vector<1x256xf32>
    %350 = arith.addf %346, %349 : vector<1x256xf32>
    %351 = vector.extract_strided_slice %117 {offsets = [2, 0], sizes = [1, 256], strides = [1, 1]} : vector<4x256xf32> to vector<1x256xf32>
    %352 = vector.broadcast %58 : f32 to vector<1x256xf32>
    %353 = arith.mulf %352, %351 : vector<1x256xf32>
    %354 = arith.addf %350, %353 : vector<1x256xf32>
    %355 = vector.extract_strided_slice %117 {offsets = [3, 0], sizes = [1, 256], strides = [1, 1]} : vector<4x256xf32> to vector<1x256xf32>
    %356 = vector.broadcast %59 : f32 to vector<1x256xf32>
    %357 = arith.mulf %356, %355 : vector<1x256xf32>
    %358 = arith.addf %354, %357 : vector<1x256xf32>
    %359 = vector.broadcast %82 : f32 to vector<1x256xf32>
    %360 = arith.addf %358, %359 : vector<1x256xf32>
    %361 = vector.extract_strided_slice %105 {offsets = [0, 0], sizes = [1, 256], strides = [1, 1]} : vector<4x256xf32> to vector<1x256xf32>
    %362 = vector.broadcast %76 : f32 to vector<1x256xf32>
    %363 = arith.mulf %362, %361 : vector<1x256xf32>
    %364 = vector.extract_strided_slice %105 {offsets = [1, 0], sizes = [1, 256], strides = [1, 1]} : vector<4x256xf32> to vector<1x256xf32>
    %365 = vector.broadcast %77 : f32 to vector<1x256xf32>
    %366 = arith.mulf %365, %364 : vector<1x256xf32>
    %367 = arith.addf %363, %366 : vector<1x256xf32>
    %368 = vector.extract_strided_slice %105 {offsets = [2, 0], sizes = [1, 256], strides = [1, 1]} : vector<4x256xf32> to vector<1x256xf32>
    %369 = vector.broadcast %78 : f32 to vector<1x256xf32>
    %370 = arith.mulf %369, %368 : vector<1x256xf32>
    %371 = arith.addf %367, %370 : vector<1x256xf32>
    %372 = vector.extract_strided_slice %105 {offsets = [3, 0], sizes = [1, 256], strides = [1, 1]} : vector<4x256xf32> to vector<1x256xf32>
    %373 = vector.broadcast %79 : f32 to vector<1x256xf32>
    %374 = arith.mulf %373, %372 : vector<1x256xf32>
    %375 = arith.addf %371, %374 : vector<1x256xf32>
    %376 = vector.extract_strided_slice %108 {offsets = [0, 0], sizes = [1, 256], strides = [1, 1]} : vector<4x256xf32> to vector<1x256xf32>
    %377 = vector.broadcast %12 : f32 to vector<1x256xf32>
    %378 = arith.mulf %377, %376 : vector<1x256xf32>
    %379 = arith.addf %375, %378 : vector<1x256xf32>
    %380 = vector.extract_strided_slice %108 {offsets = [1, 0], sizes = [1, 256], strides = [1, 1]} : vector<4x256xf32> to vector<1x256xf32>
    %381 = vector.broadcast %13 : f32 to vector<1x256xf32>
    %382 = arith.mulf %381, %380 : vector<1x256xf32>
    %383 = arith.addf %379, %382 : vector<1x256xf32>
    %384 = vector.extract_strided_slice %108 {offsets = [2, 0], sizes = [1, 256], strides = [1, 1]} : vector<4x256xf32> to vector<1x256xf32>
    %385 = vector.broadcast %14 : f32 to vector<1x256xf32>
    %386 = arith.mulf %385, %384 : vector<1x256xf32>
    %387 = arith.addf %383, %386 : vector<1x256xf32>
    %388 = vector.extract_strided_slice %108 {offsets = [3, 0], sizes = [1, 256], strides = [1, 1]} : vector<4x256xf32> to vector<1x256xf32>
    %389 = vector.broadcast %15 : f32 to vector<1x256xf32>
    %390 = arith.mulf %389, %388 : vector<1x256xf32>
    %391 = arith.addf %387, %390 : vector<1x256xf32>
    %392 = vector.extract_strided_slice %111 {offsets = [0, 0], sizes = [1, 256], strides = [1, 1]} : vector<4x256xf32> to vector<1x256xf32>
    %393 = vector.broadcast %28 : f32 to vector<1x256xf32>
    %394 = arith.mulf %393, %392 : vector<1x256xf32>
    %395 = arith.addf %391, %394 : vector<1x256xf32>
    %396 = vector.extract_strided_slice %111 {offsets = [1, 0], sizes = [1, 256], strides = [1, 1]} : vector<4x256xf32> to vector<1x256xf32>
    %397 = vector.broadcast %29 : f32 to vector<1x256xf32>
    %398 = arith.mulf %397, %396 : vector<1x256xf32>
    %399 = arith.addf %395, %398 : vector<1x256xf32>
    %400 = vector.extract_strided_slice %111 {offsets = [2, 0], sizes = [1, 256], strides = [1, 1]} : vector<4x256xf32> to vector<1x256xf32>
    %401 = vector.broadcast %30 : f32 to vector<1x256xf32>
    %402 = arith.mulf %401, %400 : vector<1x256xf32>
    %403 = arith.addf %399, %402 : vector<1x256xf32>
    %404 = vector.extract_strided_slice %111 {offsets = [3, 0], sizes = [1, 256], strides = [1, 1]} : vector<4x256xf32> to vector<1x256xf32>
    %405 = vector.broadcast %31 : f32 to vector<1x256xf32>
    %406 = arith.mulf %405, %404 : vector<1x256xf32>
    %407 = arith.addf %403, %406 : vector<1x256xf32>
    %408 = vector.extract_strided_slice %114 {offsets = [0, 0], sizes = [1, 256], strides = [1, 1]} : vector<4x256xf32> to vector<1x256xf32>
    %409 = vector.broadcast %44 : f32 to vector<1x256xf32>
    %410 = arith.mulf %409, %408 : vector<1x256xf32>
    %411 = arith.addf %407, %410 : vector<1x256xf32>
    %412 = vector.extract_strided_slice %114 {offsets = [1, 0], sizes = [1, 256], strides = [1, 1]} : vector<4x256xf32> to vector<1x256xf32>
    %413 = vector.broadcast %45 : f32 to vector<1x256xf32>
    %414 = arith.mulf %413, %412 : vector<1x256xf32>
    %415 = arith.addf %411, %414 : vector<1x256xf32>
    %416 = vector.extract_strided_slice %114 {offsets = [2, 0], sizes = [1, 256], strides = [1, 1]} : vector<4x256xf32> to vector<1x256xf32>
    %417 = vector.broadcast %46 : f32 to vector<1x256xf32>
    %418 = arith.mulf %417, %416 : vector<1x256xf32>
    %419 = arith.addf %415, %418 : vector<1x256xf32>
    %420 = vector.extract_strided_slice %114 {offsets = [3, 0], sizes = [1, 256], strides = [1, 1]} : vector<4x256xf32> to vector<1x256xf32>
    %421 = vector.broadcast %47 : f32 to vector<1x256xf32>
    %422 = arith.mulf %421, %420 : vector<1x256xf32>
    %423 = arith.addf %419, %422 : vector<1x256xf32>
    %424 = vector.extract_strided_slice %117 {offsets = [0, 0], sizes = [1, 256], strides = [1, 1]} : vector<4x256xf32> to vector<1x256xf32>
    %425 = vector.broadcast %60 : f32 to vector<1x256xf32>
    %426 = arith.mulf %425, %424 : vector<1x256xf32>
    %427 = arith.addf %423, %426 : vector<1x256xf32>
    %428 = vector.extract_strided_slice %117 {offsets = [1, 0], sizes = [1, 256], strides = [1, 1]} : vector<4x256xf32> to vector<1x256xf32>
    %429 = vector.broadcast %61 : f32 to vector<1x256xf32>
    %430 = arith.mulf %429, %428 : vector<1x256xf32>
    %431 = arith.addf %427, %430 : vector<1x256xf32>
    %432 = vector.extract_strided_slice %117 {offsets = [2, 0], sizes = [1, 256], strides = [1, 1]} : vector<4x256xf32> to vector<1x256xf32>
    %433 = vector.broadcast %62 : f32 to vector<1x256xf32>
    %434 = arith.mulf %433, %432 : vector<1x256xf32>
    %435 = arith.addf %431, %434 : vector<1x256xf32>
    %436 = vector.extract_strided_slice %117 {offsets = [3, 0], sizes = [1, 256], strides = [1, 1]} : vector<4x256xf32> to vector<1x256xf32>
    %437 = vector.broadcast %63 : f32 to vector<1x256xf32>
    %438 = arith.mulf %437, %436 : vector<1x256xf32>
    %439 = arith.addf %435, %438 : vector<1x256xf32>
    %440 = vector.broadcast %83 : f32 to vector<1x256xf32>
    %441 = arith.addf %439, %440 : vector<1x256xf32>
    %442 = tpu.concatenate %198, %279, %360, %441 in 0 : vector<1x256xf32>, vector<1x256xf32>, vector<1x256xf32>, vector<1x256xf32> -> vector<4x256xf32>
    %cst = arith.constant 0.000000e+00 : f32
    %443 = vector.broadcast %cst : f32 to vector<4x256xf32>
    %444 = arith.cmpf oge, %442, %443 : vector<4x256xf32>
    %445 = vector.broadcast %84 : f32 to vector<4x256xf32>
    %446 = arith.mulf %445, %442 : vector<4x256xf32>
    %447 = arith.select %444, %442, %446 : vector<4x256xi1>, vector<4x256xf32>
    %448 = arith.addf %447, %105 : vector<4x256xf32>
    %c0_11 = arith.constant 0 : index
    %c0_12 = arith.constant 0 : index
    %c0_13 = arith.constant 0 : index
    %449 = vector.load %arg5[%c0_11, %c0_12, %c0_13] : memref<1x4x256xf32, #tpu.memory_space<vmem>>, vector<1x4x256xf32>
    %450 = vector.shape_cast %449 : vector<1x4x256xf32> to vector<4x256xf32>
    %451 = vector.shape_cast %448 : vector<4x256xf32> to vector<1x4x256xf32>
    tpu.vector_store %arg5[%c0_11, %c0_12, %c0_13], %451 {strides = array<i32>} : memref<1x4x256xf32, #tpu.memory_space<vmem>>, vector<1x4x256xf32>,
    return
  }
  func.func @transform_0(%arg0: i32) -> (i32, i32, i32) {
    %c0_i32 = arith.constant 0 : i32
    %c0_i32_0 = arith.constant 0 : i32
    %c0_i32_1 = arith.constant 0 : i32
    return %arg0, %c0_i32, %c0_i32_0 : i32, i32, i32
  }
  func.func @transform_1(%arg0: i32) -> i32 {
    %c0_i32 = arith.constant 0 : i32
    %c0_i32_0 = arith.constant 0 : i32
    return %c0_i32 : i32
  }
  func.func @transform_2(%arg0: i32) -> i32 {
    %c0_i32 = arith.constant 0 : i32
    %c0_i32_0 = arith.constant 0 : i32
    return %c0_i32 : i32
  }
  func.func @transform_3(%arg0: i32) -> i32 {
    %c0_i32 = arith.constant 0 : i32
    %c0_i32_0 = arith.constant 0 : i32
    return %c0_i32 : i32
  }
  func.func @transform_4(%arg0: i32) -> (i32, i32, i32) {
    %c0_i32 = arith.constant 0 : i32
    %c0_i32_0 = arith.constant 0 : i32
    %c0_i32_1 = arith.constant 0 : i32
    return %arg0, %c0_i32, %c0_i32_0 : i32, i32, i32
  }
}

</mosaic_0001>

<bundles_post_ra>
// kernel: tpu_custom_call.1
= control target key start
LH: loop header
LB: loop body
LE: loop exit
PB: predicated region body
PF: predicated region fallthrough
CT: control target
= control target key end

     0   :  { %s2661_s0 = inlined_call_operand.hbm [shape: f32[2,4,256], index: 0, kind: input, shape index: {}]   ;;  %s2662_s1 = inlined_call_operand.vmem [shape: f32[80], index: 1, kind: input, shape index: {}]   ;;  %s2663_s2 = inlined_call_operand.vmem [shape: f32[4], index: 2, kind: input, shape index: {}]   ;;  %s2664_s3 = inlined_call_operand.<no memory space> [shape: f32[1], index: 3, kind: input, shape index: {}]   ;;  %s2665_s4 = inlined_call_operand.hbm [shape: f32[2,4,256], index: 4, kind: output, shape index: {}]  }
   0x1   :  { %2736 = sst [smem:[#allocation52_spill]] %s2661_s0 }
   0x2   :  { %2737 = sst [smem:[#allocation53_spill]] %s2662_s1 }
   0x3   :  { %2738 = sst [smem:[#allocation54_spill]] %s2663_s2 }
   0x4   :  { %2739 = sst [smem:[#allocation55_spill]] %s2665_s4 }
   0x5   :  { %9 = sst [smem:[#allocation2]] %s2664_s3 }
   0x6   :  { %10 = vsyncpa [#allocation4], 0 }
   0x7   :  { %12 = vsyncpa [#allocation4 + $0x1], 0 }
   0x8   :  { %13 = vsyncpa [#allocation6], 0 }
   0x9   :  { %14 = vsyncpa [#allocation9], 0 }
   0xa   :  { %15 = vsyncpa [#allocation5], 0 }
   0xb   :  { %17 = vsyncpa [#allocation5 + $0x1], 0  ;;  %s1693_s17 = smov 0   ;;  %s1695_s18 = smov 0  }
   0xc   :  { %s1697_s19 = smov 0   ;;  %s1699_s20 = smov 0  }
   0xd LB: > { %2740 = sst [smem:[#allocation15_spill]] %s1642_s17  ;;  %s1714_s3 = sadd.s32 4294967295, %s1654_s20   ;;  %s1654_s20 = sphi %s1699_s20, %s2879_s20   ;;  %s1650_s19 = sphi %s1697_s19, %s2882_s19   ;;  %s1646_s18 = sphi %s1695_s18, %s2881_s18   ;;  %s1642_s17 = sphi %s1693_s17, %s2880_s17  }
   0xe   : > { %2741 = sst [smem:[#allocation16_spill]] %s1646_s18  ;;  %s1278_s21 = sadd.s32 4294967294, %s1654_s20  }
   0xf   : > { %2742 = sst [smem:[#allocation17_spill]] %s1650_s19  ;;  %p43_p0 = scmp.ne.s32.totalorder %s1646_s18, %s1642_s17 }
  0x10   : > { %2743 = sst [smem:[#allocation18_spill]] %s1654_s20  ;;  %p2666_p1 = scmp.eq.s32.totalorder %s1714_s3, 0 }
  0x11   : > { %2744 = sst [smem:[#allocation19_spill]] %s1714_s3  ;;  %p136_p3 = scmp.eq.s32.totalorder %s1278_s21, 1 }
  0x12   : > { %p1723_p4 = por %p2666_p1, %p43_p0  ;;  %p1279_p5 = scmp.ge.s32.totalorder %s1654_s20, 1 }
  0x13   : > { %p1728_p6 = por %p136_p3, %p43_p0  ;;  %p143_p7 = scmp.lt.s32.totalorder %s1654_s20, 3 }
  0x14   : > { %s2745_s22 = scalar_select %p1723_p4, 1, 0 }
  0x15   : > { %s2746_s23 = scalar_select %p1728_p6, 1, 0 }
  0x16   : > { %s2748_s1 = sld [smem:[#allocation53_spill]]  ;;  %p1736_p8 = pnand %p1279_p5, %p143_p7 }
  0x17   : > { %2747 = sst [smem:[#allocation20_spill]] %s2746_s23  ;;  %s2750_s2 = sld [smem:[#allocation54_spill]] }
  0x18   : > { %s2749_s27 = scalar_select %p1736_p8, 1, 0 }
  0x19   : > { %p1458_p10 = pneg %p1736_p8  ;;  %s1753_s6 = sadd.s32 1, %s1654_s20  }
  0x1a   : > { %2752 = sst [smem:[#allocation21_spill]] %s1753_s6  ;;  %s27_s7 = ssub.s32 %s1654_s20, %s1753_s6 }
  0x1b   : > { %p1748_p11 = pnand %p1458_p10, %p2666_p1 }
  0x1c   : > { %s156_s26 = sshll.u32 %s2748_s1, 4  ;;  %s157_s26 = int_to_ptr.vmem [resolvable:$true] %s156_s26 }
  0x1d   : > { %s167_s30 = sshll.u32 %s2750_s2, 4  ;;  %s1520_s8 = scalar_lea.vmem %s157_s26, 16  ;;  %s168_s30 = int_to_ptr.vmem [resolvable:$true] %s167_s30 }
  0x1e   : > { %p1521_p12 = scmp.ne.s32.totalorder %s157_s26, %s1520_s8  ;;  %p1522_p13 = pneg %p1748_p11 }
  0x1f   : > { %p1528_p5 = scmp.lt.s32.totalorder %s157_s26, %s157_s26  ;;  %p1529_p7 = scmp.lt.s32.totalorder %s1520_s8, %s1520_s8 }
  0x20   : > { %p1523_p0 = pnand %p1522_p13, %p1521_p12 }
  0x21   : > { %p1530_p9 = por %p1529_p7, %p1528_p5 }
  0x22   : > { %p1524_p3 = pneg %p1523_p0 }
  0x24   : > { %p1531_p2 = pnand %p1530_p9, %p1524_p3 }
  0x26   : > { %1534 = shalt.err (!%p1531_p2)
}
  0x27   : > { %s1656_s9 = smov [#allocation7]   ;;  %s1535_s10 = scalar_lea.vmem %s168_s30, 16 }
  0x28   : > { %1461 = dma.vmem_to_smem (!%p1748_p11), %s157_s26, 16, %s1656_s9, [#allocation6]  }
  0x29   : > { %p1536_p10 = scmp.ne.s32.totalorder %s168_s30, %s1535_s10  ;;  %p1543_p4 = scmp.lt.s32.totalorder %s168_s30, %s168_s30 }
  0x2a   : > { %p1544_p8 = scmp.lt.s32.totalorder %s1535_s10, %s1535_s10 }
  0x2b   : > { %p1538_p1 = pnand %p1536_p10, %p1522_p13 }
  0x2c   : > { %p1545_p12 = por %p1544_p8, %p1543_p4 }
  0x2d   : > { %p1539_p6 = pneg %p1538_p1 }
  0x2f   : > { %p1546_p0 = pnand %p1545_p12, %p1539_p6 }
  0x31   : > { %1549 = shalt.err (!%p1546_p0)
}
  0x32   : > { %s1657_s11 = smov [#allocation8]   ;;  %p28_p2 = scmp.eq.s32.totalorder %s27_s7, 0 }
  0x33   : > { %1464 = dma.vmem_to_smem (!%p1748_p11), %s168_s30, 16, %s1657_s11, [#allocation9]  }
  0x34   : > { %s30_s12 = sadd.s32 1, %s1650_s19  ;;  %p37_p1 = scmp.ne.s32.totalorder %s1650_s19, %s1646_s18 }
  0x35   : > { %p38_p9 = scmp.eq.s32.totalorder %s1654_s20, 0  ;;  %p2754_p6 = scmp.eq.s32.totalorder %s1714_s3, 1 }
  0x36   : > { %s1768_s13 = scalar_select %p28_p2, %s1650_s19, %s30_s12  }
  0x37   : > { %p39_p4 = por %p38_p9, %p37_p1  ;;  %p1772_p8 = por %p2754_p6, %p37_p1 }
  0x38   : > { %2753 = sst [smem:[#allocation22_spill]] %s1768_s13  ;;  %p1475_p13 = scmp.lt.s32.totalorder %s1654_s20, 2 }
  0x39   : > { %s2755_s14 = scalar_select %p1772_p8, 1, 0 }
  0x3a   : > { %s181_s15 = sand.u32 1, %s1650_s19   ;;  %s1444_s21 = sshll.u32 %s1654_s20, 7 }
  0x3b   : > { %2756 = sst [smem:[#allocation23_spill]] %s2755_s14  ;;  %s1283_s16 = sshll.u32 %s181_s15, 3 }
  0x3c   : > { %s2757_s0 = sld [smem:[#allocation52_spill]]  ;;  %s185_s28 = scalar_lea.vmem [#allocation3], %s1283_s16 }
  0x3d   : > { %s193_s29 = sshll.u32 %s185_s28, 4  ;;  %p1786_p11 = pnand %p1475_p13, %p39_p4  ;;  %s1784_s29 = int_to_ptr.vmem [resolvable:$true] %s193_s29 }
  0x3e   : > { %s182_s5 = scalar_lea.sflag [#allocation4], %s181_s15 }
  0x3f   : > { %p1552_p5 = pneg %p1786_p11 }
  0x42   : > { %s1782_s26 = scalar_lea.hbm %s2757_s0, %s1444_s21  ;;  %s1555_s10 = scalar_lea.hbm %s2757_s0, 256 }
  0x43   : > { %s1550_s7 = scalar_lea.hbm %s1782_s26, 128  ;;  %p1556_p12 = scmp.lt.u32.totalorder %s1782_s26, %s2757_s0 }
  0x44   : > { %p1551_p3 = scmp.ne.s32.totalorder %s1782_s26, %s1550_s7  ;;  %p1557_p0 = scmp.lt.u32.totalorder %s1555_s10, %s1550_s7 }
  0x45   : > { %p1559_p1 = scmp.lt.u32.totalorder %s1550_s7, %s1782_s26 }
  0x46   : > { %p1553_p7 = pnand %p1552_p5, %p1551_p3  ;;  %p1558_p2 = por %p1557_p0, %p1556_p12 }
  0x48   : > { %p1554_p10 = pneg %p1553_p7  ;;  %p1560_p9 = por %p1559_p1, %p1558_p2 }
  0x4a   : > { %p1561_p4 = pnand %p1560_p9, %p1554_p10 }
  0x4c   : > { %1564 = shalt.err (!%p1561_p4)
}
  0x4d   : > { %s1565_s15 = scalar_lea.vmem %s1784_s29, 128  ;;  %s1658_s16 = smov [#allocation3]  }
  0x4e   : > { %p1566_p6 = scmp.ne.s32.totalorder %s1784_s29, %s1565_s15  ;;  %s1570_s21 = sshll.u32 %s1658_s16, 4  ;;  %s1571_s21 = int_to_ptr.vmem [resolvable:$false] %s1570_s21 }
  0x4f   : > { %s1572_s24 = scalar_lea.vmem %s1571_s21, 256  ;;  %p1573_p7 = scmp.lt.s32.totalorder %s1784_s29, %s1571_s21 }
  0x50   : > { %p1568_p13 = pnand %p1566_p6, %p1552_p5  ;;  %p1574_p12 = scmp.lt.s32.totalorder %s1572_s24, %s1565_s15 }
  0x52   : > { %p1569_p3 = pneg %p1568_p13  ;;  %p1575_p0 = por %p1574_p12, %p1573_p7 }
  0x54   : > { %p1576_p2 = pnand %p1575_p0, %p1569_p3 }
  0x56   : > { %1579 = shalt.err (!%p1576_p2)
}
  0x57   : > { %1468 = dma.hbm_to_vmem [thread:$0]  (!%p1786_p11), %s1782_s26, 128, %s1784_s29, %s182_s5  }
  0x58   : > { %p2759_p10 = scmp.ne.s32.totalorder %s2749_s27, 0 }
  0x5a   : > { %202 = sbr.rel (%p2759_p10) target bundleno = 360 (0x168), region = 36 }
  0x61   : > { %s1818_s25 = sand.u32 1, %s1646_s18   ;;  %p2762_p5 = scmp.ne.s32.totalorder %s2745_s22, 0 }
  0x62   : > { %2760 = sst [smem:[#allocation24_spill]] %s1818_s25  ;;  %s2669_s28 = sshll.u32 %s1818_s25, 3 }
  0x63   : > { %s205_s7 = scalar_lea.sflag [#allocation4], %s1818_s25  ;;  %s1824_s8 = scalar_lea.vmem [#allocation3], %s2669_s28 }
  0x64   : > { %2761 = sst [smem:[#allocation25_spill]] %s1824_s8 }
  0x65   : > { %1625 = dma.done.wait (%p2762_p5), %s205_s7, 128  }
  0x66   : > { %1627 = vsyncadd (%p2762_p5), %s205_s7, 4294967168  ;;  %p2763_p11 = scmp.eq.s32.totalorder %s1714_s3, 0 }
  0x68   : > { %1629 = dma.done.wait (%p2763_p11), [#allocation6], 16   ;;  %p2764_p1 = pmov %p2763_p11 }
  0x6a   : > { %1631 = vsyncadd (%p2764_p1), [#allocation6], 4294967280  ;;  %p2765_p9 = pmov %p2764_p1 }
  0x6b   : > { %p2766_p4 = pmov %p2764_p1 }
  0x6c   : > { %1633 = dma.done.wait (%p2765_p9), [#allocation9], 16  }
  0x6d   : > { %1635 = vsyncadd (%p2766_p4), [#allocation9], 4294967280 }
  0x6e   : > { %221 = sfence }
  0x6f   : > { %v1839_v0 = vld [vmem:[%s1824_s8] sm:$0xff]  ;;  %s1659_s27 = smov 16   ;;  %s1660_s22 = smov 112   ;;  %v2722_v2 = vlaneseq  ;;  %v1663_v7 = vmov 0.0   ;;  %vm1148_vm10 = vcmask 1040384   ;;  %vm1151_vm11 = vcmask 1041408  }
  0x70   : > { %360 = vrot.lane.b32.xlu0 %v1839_v0, %s1659_s27  ;;  %369 = vrot.lane.b32.xlu1 %v1839_v0, %s1660_s22  ;;  %v1845_v1 = vcombine.high %v1839_v0, %v1839_v0  ;;  %s1661_s26 = smov 1   ;;  %s1662_s29 = smov 127   ;;  %vm1154_vm12 = vcmask 1042432  }
  0x71   : > { %s1853_s30 = sld [smem:[#allocation7]]  ;;  %s1855_s5 = sld [smem:[#allocation7 + $0x1]]  ;;  %v1860_v3 = vand.u32 127, %v2722_v2 }
  0x72   : > { %s1857_s9 = sld [smem:[#allocation7 + $0x2]]  ;;  %s1862_s10 = sld [smem:[#allocation7 + $0x3]] }
  0x73   : > { %s1864_s11 = sld [smem:[#allocation7 + $0x4]]  ;;  %s1866_s12 = sld [smem:[#allocation7 + $0x5]]  ;;  %v329_v4 = vadd.s32 128, %v1860_v3  ;;  %v330_v5 = vand.u32 15, %v1860_v3  ;;  %vm332_vm0 = vcmp.ge.s32.totalorder %v1860_v3, 16  ;;  %vm364_vm6 = vcmp.lt.s32.totalorder %v1860_v3, 16 }
  0x74   : > { %362 = vrot.lane.b32.xlu0 %v1845_v1, %s1659_s27  ;;  %371 = vrot.lane.b32.xlu1 %v1845_v1, %s1660_s22  ;;  %s1868_s15 = sld [smem:[#allocation7 + $0x6]]  ;;  %s1870_s16 = sld [smem:[#allocation7 + $0x7]]  ;;  %v1909_v8 = vsel %vm332_vm0, 1.0, %v1663_v7  ;;  %vm373_vm7 = vcmp.lt.s32.totalorder %v1860_v3, 112  ;;  %vm382_vm8 = vcmp.lt.s32.totalorder %v1860_v3, 1  ;;  %vm391_vm9 = vcmp.lt.s32.totalorder %v1860_v3, 127 }
  0x75   : > { %s1872_s21 = sld [smem:[#allocation7 + $0x8]]  ;;  %s1874_s24 = sld [smem:[#allocation7 + $0x9]]  ;;  %v331_v6 = vand.u32 15, %v329_v4  ;;  %vm339_vm1 = vcmp.lt.s32.totalorder %v329_v4, 240  ;;  %vm344_vm2 = vcmp.ne.s32.totalorder %v330_v5, 0  ;;  %vm350_vm4 = vcmp.ne.s32.totalorder %v330_v5, 15 }
  0x76   : > { %s1876_s7 = sld [smem:[#allocation7 + $0xa]]  ;;  %s1879_s27 = sld [smem:[#allocation7 + $0xb]]  ;;  %v1915_v9 = vsel %vm339_vm1, 1.0, %v1663_v7  ;;  %v1917_v10 = vsel %vm344_vm2, 1.0, %v1663_v7  ;;  %v1925_v12 = vsel %vm350_vm4, 1.0, %v1663_v7 }
  0x77   : > { %s1881_s22 = sld [smem:[#allocation7 + $0x10]]  ;;  %s1888_s28 = sld [smem:[#allocation7 + $0x13]]  ;;  %vm345_vm3 = vcmp.ne.s32.totalorder %v331_v6, 0  ;;  %vm351_vm5 = vcmp.ne.s32.totalorder %v331_v6, 15  ;;  %v419_v14 = vstv %s1853_s30  ;;  %v427_v15 = vstv %s1855_s5 }
  0x78   : > { %380 = vrot.lane.b32.xlu1 %v1845_v1, %s1661_s26  ;;  %378 = vrot.lane.b32.xlu0 %v1839_v0, %s1661_s26  ;;  %2767 = sst [smem:[#allocation26_spill]] %s1857_s9  ;;  %s1884_s26 = sld [smem:[#allocation7 + $0x11]]  ;;  %v1923_v11 = vsel %vm345_vm3, 1.0, %v1663_v7  ;;  %v1931_v13 = vsel %vm351_vm5, 1.0, %v1663_v7  ;;  %v437_v16 = vstv %s1857_s9  ;;  %v447_v18 = vstv %s1862_s10 }
  0x79   : > { %2768 = sst [smem:[#allocation27_spill]] %s1864_s11  ;;  %s1892_s1 = sld [smem:[#allocation7 + $0x15]]  ;;  %v596_v19 = vstv %s1864_s11  ;;  %v604_v20 = vstv %s1866_s12 }
  0x7a   : > { %2769 = sst [smem:[#allocation28_spill]] %s1866_s12  ;;  %s1890_s0 = sld [smem:[#allocation7 + $0x14]]  ;;  %v614_v22 = vstv %s1868_s15  ;;  %v624_v23 = vstv %s1870_s16 }
  0x7b   : > { %2770 = sst [smem:[#allocation29_spill]] %s1868_s15  ;;  %s1894_s2 = sld [smem:[#allocation7 + $0x41]]  ;;  %v773_v24 = vstv %s1872_s21 }
  0x7c   : > { %389 = vrot.lane.b32.xlu1 %v1845_v1, %s1662_s29  ;;  %387 = vrot.lane.b32.xlu0 %v1839_v0, %s1662_s29  ;;  %2771 = sst [smem:[#allocation30_spill]] %s1870_s16  ;;  %s1886_s29 = sld [smem:[#allocation7 + $0x12]] }
  0x7d   : > { %2772 = sst [smem:[#allocation31_spill]] %s1872_s21  ;;  %s1897_s13 = sld [smem:[#allocation7 + $0x16]]  ;;  %v457_v21 = vstv %s1881_s22  ;;  %v485_v27 = vstv %s1888_s28 }
  0x7e   : > { %2773 = sst [smem:[#allocation32_spill]] %s1874_s24  ;;  %s1899_s19 = sld [smem:[#allocation7 + $0x17]]  ;;  %v465_v25 = vstv %s1884_s26 }
  0x7f   : > { %2774 = sst [smem:[#allocation33_spill]] %s1876_s7  ;;  %s1901_s18 = sld [smem:[#allocation7 + $0x20]]  ;;  %v642_v31 = vstv %s1892_s1 }
  0x80   : > { %2775 = sst [smem:[#allocation34_spill]] %s1879_s27  ;;  %s1903_s6 = sld [smem:[#allocation7 + $0x45]]  ;;  %v634_v30 = vstv %s1890_s0 }
  0x81   : > { %2776 = sst [smem:[#allocation35_spill]] %s1881_s22  ;;  %s1905_s20 = sld [smem:[#allocation7 + $0x21]]  ;;  %v398_v17 = vstv %s1894_s2 }
  0x82   : > { %2777 = sst [smem:[#allocation36_spill]] %s1886_s29  ;;  %s1907_s23 = sld [smem:[#allocation7 + $0x22]]  ;;  %v475_v26 = vstv %s1886_s29  ;;  %v399_v29 = vmul.f32 %v398_v17, %v1839_v0 }
  0x83   : > { %2778 = sst [smem:[#allocation37_spill]] %s1888_s28  ;;  %s1911_s17 = sld [smem:[#allocation7 + $0x40]]  ;;  %v652_v32 = vstv %s1897_s13 }
  0x84   : > { %2779 = sst [smem:[#allocation38_spill]] %s1890_s0  ;;  %s1913_s4 = sld [smem:[#allocation7 + $0x42]]  ;;  %v662_v36 = vstv %s1899_s19  ;;  %v1379_v46 = vrot.slane %v399_v29, 9 }
  0x85   : > { %2780 = sst [smem:[#allocation39_spill]] %s1892_s1  ;;  %s1919_s14 = sld [smem:[#allocation7 + $0x44]]  ;;  %v495_v35 = vstv %s1901_s18 }
  0x86   : > { %2781 = sst [smem:[#allocation40_spill]] %s1897_s13  ;;  %s1927_s25 = sld [smem:[#allocation7 + $0x23]]  ;;  %v575_v28 = vstv %s1903_s6 }
  0x87   : > { %2782 = sst [smem:[#allocation41_spill]] %s1899_s19  ;;  %s1921_s8 = sld [smem:[#allocation7 + $0x49]]  ;;  %v503_v37 = vstv %s1905_s20  ;;  %v576_v39 = vmul.f32 %v575_v28, %v1839_v0 }
  0x88   : > { %2783 = sst [smem:[#allocation42_spill]] %s1907_s23  ;;  %s1929_s3 = sld [smem:[#allocation7 + $0x46]]  ;;  %v513_v41 = vstv %s1907_s23 }
  0x89   : > { %s1933_s27 = sld [smem:[#allocation7 + $0x24]]  ;;  %s1935_s7 = sld [smem:[#allocation7 + $0x25]]  ;;  %v396_v33 = vstv %s1911_s17  ;;  %v1394_v53 = vrot.slane %v576_v39, 9 }
  0x8a   : > { %s1940_s24 = sld [smem:[#allocation7 + $0x26]]  ;;  %s1956_s9 = sld [smem:[#allocation7 + $0x27]]  ;;  %v405_v34 = vstv %s1913_s4  ;;  %v397_v45 = vmul.f32 %v396_v33, %v1839_v0 }
  0x8b   : > { %s1958_s2 = sld [smem:[#allocation7 + $0x47]]  ;;  %s1964_s12 = sld [smem:[#allocation7 + $0xc]]  ;;  %v573_v38 = vstv %s1919_s14  ;;  %v406_v47 = vmul.f32 %v405_v34, %v1839_v0 }
  0x8c   : > { %2784 = sst [smem:[#allocation43_spill]] %s1927_s25  ;;  %s1942_s25 = sld [smem:[#allocation7 + $0x43]]  ;;  %v574_v50 = vmul.f32 %v573_v38, %v1839_v0  ;;  %v404_v61 = vadd.f32 %v1379_v46, %v397_v45 }
  0x8d   : > { %s1966_s11 = sld [smem:[#allocation7 + $0x18]]  ;;  %s2790_s21 = sld [smem:[#allocation43_spill]]  ;;  %v752_v40 = vstv %s1921_s8  ;;  %v1380_v62 = vrot.slane %v406_v47, 10 }
  0x8e   : > { %s1972_s16 = sld [smem:[#allocation7 + $0x19]]  ;;  %s1974_s15 = sld [smem:[#allocation7 + $0x30]]  ;;  %v582_v43 = vstv %s1929_s3  ;;  %v753_v51 = vmul.f32 %v752_v40, %v1839_v0  ;;  %v581_v28 = vadd.f32 %v1394_v53, %v574_v50 }
  0x8f   : > { %2785 = sst [smem:[#allocation44_spill]] %s1933_s27  ;;  %s1948_s27 = sld [smem:[#allocation7 + $0x48]]  ;;  %v583_v54 = vmul.f32 %v582_v43, %v1839_v0  ;;  %v411_v45 = vadd.f32 %v1380_v62, %v404_v61 }
  0x90   : > { %2786 = sst [smem:[#allocation45_spill]] %s1935_s7  ;;  %s1950_s7 = sld [smem:[#allocation7 + $0x4a]]  ;;  %v690_v59 = vstv %s1940_s24  ;;  %v700_v60 = vstv %s1956_s9  ;;  %v1409_v7 = vrot.slane %v753_v51, 9 }
  0x91   : > { %2787 = sst [smem:[#allocation46_spill]] %s1940_s24  ;;  %s2791_s28 = sld [smem:[#allocation32_spill]]  ;;  %v589_v57 = vstv %s1958_s2  ;;  %v1395_v29 = vrot.slane %v583_v54, 10 }
  0x92   : > { %2788 = sst [smem:[#allocation47_spill]] %s1956_s9  ;;  %s1980_s6 = sld [smem:[#allocation7 + $0x31]]  ;;  %v412_v49 = vstv %s1942_s25  ;;  %v590_v33 = vmul.f32 %v589_v57, %v1839_v0 }
  0x93   : > { %2789 = sst [smem:[#allocation48_spill]] %s1964_s12  ;;  %s1982_s29 = sld [smem:[#allocation7 + $0x4b]]  ;;  %v523_v42 = vstv %s2790_s21  ;;  %v413_v63 = vmul.f32 %v412_v49, %v1839_v0 }
  0x94   : > { %s2792_s22 = sld [smem:[#allocation44_spill]]  ;;  %s1988_s13 = sld [smem:[#allocation7 + $0x32]]  ;;  %v533_v5 = vstv %s1974_s15 }
  0x95   : > { %s1990_s0 = sld [smem:[#allocation7 + $0x33]]  ;;  %s1996_s4 = sld [smem:[#allocation7 + $0x1a]]  ;;  %v750_v55 = vstv %s1948_s27  ;;  %v1381_v46 = vrot.slane %v413_v63, 11 }
  0x96   : > { %s1998_s17 = sld [smem:[#allocation7 + $0x1b]]  ;;  %s2794_s14 = sld [smem:[#allocation45_spill]]  ;;  %v759_v56 = vstv %s1950_s7  ;;  %v751_v6 = vmul.f32 %v750_v55, %v1839_v0  ;;  %v588_v55 = vadd.f32 %v1395_v29, %v581_v28 }
  0x97   : > { %v781_v44 = vstv %s2791_s28  ;;  %s2003_s8 = sld [smem:[#allocation7 + $0x34]]  ;;  %s2005_s19 = sld [smem:[#allocation7 + $0x35]]  ;;  %v760_v17 = vmul.f32 %v759_v56, %v1839_v0  ;;  %v1396_v56 = vrot.slane %v590_v33, 11 }
  0x98   : > { %s2011_s3 = sld [smem:[#allocation7 + $0x36]]  ;;  %s2013_s28 = sld [smem:[#allocation7 + $0x4d]]  ;;  %v541_v38 = vstv %s1980_s6  ;;  %v758_v50 = vadd.f32 %v1409_v7, %v751_v6 }
  0x99   : > { %s2020_s23 = sld [smem:[#allocation7 + $0x4c]]  ;;  %s2026_s25 = sld [smem:[#allocation7 + $0x4e]]  ;;  %v766_v34 = vstv %s1982_s29  ;;  %v1410_v51 = vrot.slane %v760_v17, 10  ;;  %v2077_v6 = vadd.f32 %v1396_v56, %v588_v55 }
  0x9a   : > { %v672_v48 = vstv %s2792_s22  ;;  %s2018_s22 = sld [smem:[#allocation7 + $0x37]]  ;;  %s2028_s1 = sld [smem:[#allocation8]]  ;;  %v551_v39 = vstv %s1988_s13  ;;  %v767_v53 = vmul.f32 %v766_v34, %v1839_v0  ;;  %v418_v34 = vadd.f32 %v1381_v46, %v411_v45 }
  0x9b   : > { %s2034_s7 = sld [smem:[#allocation7 + $0x28]]  ;;  %s2036_s27 = sld [smem:[#allocation7 + $0x29]]  ;;  %v561_v40 = vstv %s1990_s0  ;;  %v765_v43 = vadd.f32 %v1410_v51, %v758_v50 }
  0x9c   : > { %v680_v58 = vstv %s2794_s14  ;;  %s2041_s2 = sld [smem:[#allocation7 + $0x2a]]  ;;  %s2043_s21 = sld [smem:[#allocation7 + $0x4f]]  ;;  %v1411_v57 = vrot.slane %v767_v53, 11 }
  0x9d   : > { %s2047_s9 = sld [smem:[#allocation7 + $0xd]]  ;;  %s2049_s24 = sld [smem:[#allocation7 + $0x2b]] }
  0x9e   : > { %s2055_s14 = sld [smem:[#allocation7 + $0xe]]  ;;  %v929_v61 = vstv %s2013_s28  ;;  %s2068_s29 = sld [smem:[#allocation7 + $0xf]] }
  0x9f   : > { %s2070_s12 = sld [smem:[#allocation7 + $0x38]]  ;;  %v927_v29 = vstv %s2020_s23  ;;  %v936_v33 = vstv %s2026_s25  ;;  %v930_v47 = vmul.f32 %v929_v61, %v1839_v0  ;;  %s2112_s28 = sld [smem:[#allocation7 + $0x1c]] }
  0xa0   : > { %2796 = sst [smem:[#allocation49_spill]] %s2028_s1  ;;  %v928_v45 = vmul.f32 %v927_v29, %v1839_v0  ;;  %v2085_v46 = vmul.f32 %v936_v33, %v1839_v0  ;;  %v2100_v29 = vadd.f32 %v1411_v57, %v765_v43  ;;  %s2135_s25 = sld [smem:[#allocation7 + $0x1e]] }
  0xa1   : > { %v849_v54 = vstv %s2034_s7  ;;  %v857_v7 = vstv %s2036_s27  ;;  %v1424_v33 = vrot.slane %v930_v47, 9  ;;  %s2137_s1 = sld [smem:[#allocation7 + $0x1f]]  ;;  %s2151_s5 = sld [smem:[#allocation7 + $0x39]] }
  0xa2   : > { %v943_v2 = vstv %s2043_s21  ;;  %s2114_s21 = sld [smem:[#allocation7 + $0x1d]]  ;;  %s2160_s23 = sld [smem:[#allocation7 + $0x3a]] }
  0xa3   : > { %v2103_v28 = vmul.f32 %v943_v2, %v1839_v0  ;;  %s2168_s26 = sld [smem:[#allocation7 + $0x2c]]  ;;  %s2256_s20 = sld [smem:[#allocation7 + $0x2d]] }
  0xa4   : > { %2797 = sst [smem:[#allocation50_spill]] %s2055_s14  ;;  %s2285_s10 = sld [smem:[#allocation7 + $0x2f]] }
  0xa5   : > { %2798 = sst [smem:[#allocation51_spill]] %s2068_s29  ;;  %s2170_s14 = sld [smem:[#allocation7 + $0x3b]] }
  0xa6   : > { %s2287_s18 = sld [smem:[#allocation7 + $0x3c]]  ;;  %s2295_s29 = sld [smem:[#allocation7 + $0x3d]] }
  0xa7   : > { %s2822_s15 = sld [smem:[#allocation33_spill]]  ;;  %s2823_s6 = sld [smem:[#allocation34_spill]] }
  0xa8   : > { %2802 = sst [smem:[#allocation26_spill]] %s2160_s23  ;;  %s2867_s7 = sld [smem:[#allocation19_spill]] }
  0xa9   : > { %2803 = sst [smem:[#allocation35_spill]] %s2168_s26  ;;  %s2868_s27 = sld [smem:[#allocation24_spill]] }
  0xaa   : > { %s1664_s0 = smov [#allocation10]  }
  0xab   : > { %2805 = sst [smem:[#allocation36_spill]] %s2170_s14 }
  0xaf   : > { %s1172_s13 = scalar_lea.sflag [#allocation5], %s2868_s27 }
  0xe2   : > { %v361_v62 = vpop.permute.xlu0 %360  ;;  %v370_v63 = vpop.permute.xlu1 %369 }
  0xe6   : > { %v363_v49 = vpop.permute.xlu0 %362  ;;  %v372_v4 = vpop.permute.xlu1 %371 }
  0xe7   : > { %v2090_v51 = vsel %vm364_vm6, %v361_v62, %v363_v49  ;;  %v366_v53 = vsel %vm364_vm6, %v363_v49, %v361_v62  ;;  %v375_v55 = vsel %vm373_vm7, %v372_v4, %v370_v63  ;;  %v2107_v49 = vsel %vm373_vm7, %v370_v63, %v372_v4 }
  0xe8   : > { %v2098_v61 = vmul.f32 %v1909_v8, %v366_v53  ;;  %v2110_v62 = vmul.f32 %v1915_v9, %v375_v55  ;;  %v421_v8 = vmul.f32 %v419_v14, %v2090_v51  ;;  %v429_v0 = vmul.f32 %v427_v15, %v2090_v51 }
  0xe9   : > { %v439_v63 = vmul.f32 %v437_v16, %v2090_v51  ;;  %v887_v53 = vstv %s2070_s12  ;;  %v1425_v55 = vrot.slane %v2085_v46, 10 }
  0xea   : > { %v381_v2 = vpop.permute.xlu1 %380  ;;  %v379_v43 = vpop.permute.xlu0 %378  ;;  %v420_v9 = vmul.f32 %v419_v14, %v2098_v61  ;;  %v428_v4 = vmul.f32 %v427_v15, %v2098_v61  ;;  %v438_v47 = vmul.f32 %v437_v16, %v2098_v61  ;;  %v448_v57 = vmul.f32 %v447_v18, %v2098_v61 }
  0xeb   : > { %v449_v14 = vmul.f32 %v447_v18, %v2090_v51  ;;  %v383_v15 = vsel %vm382_vm8, %v379_v43, %v381_v2  ;;  %v384_v56 = vsel %vm382_vm8, %v381_v2, %v379_v43  ;;  %v466_v16 = vmul.f32 %v465_v25, %v2107_v49 }
  0xec   : > { %v424_v50 = vcombine.low %v420_v9, %v421_v8  ;;  %v432_v52 = vcombine.low %v428_v4, %v429_v0  ;;  %v442_v17 = vcombine.low %v438_v47, %v439_v63  ;;  %v467_v18 = vmul.f32 %v465_v25, %v2110_v62 }
  0xed   : > { %v452_v0 = vcombine.low %v448_v57, %v449_v14  ;;  %v935_v43 = vadd.f32 %v1424_v33, %v928_v45  ;;  %v2163_v9 = vmul.f32 %v1917_v10, %v384_v56  ;;  %v2166_v4 = vmul.f32 %v1923_v11, %v383_v15 }
  0xee   : > { %v426_v2 = vadd.f32 %v424_v50, %v418_v34  ;;  %v1382_v8 = vrot.slane %v432_v52, 9  ;;  %v458_v25 = vmul.f32 %v457_v21, %v2107_v49  ;;  %v459_v52 = vmul.f32 %v457_v21, %v2110_v62  ;;  %v390_v47 = vpop.permute.xlu1 %389  ;;  %v388_v21 = vpop.permute.xlu0 %387 }
  0xef   : > { %v1383_v45 = vrot.slane %v442_v17, 10  ;;  %v476_v10 = vmul.f32 %v475_v26, %v2107_v49  ;;  %v477_v11 = vmul.f32 %v475_v26, %v2110_v62  ;;  %v470_v46 = vcombine.low %v466_v16, %v467_v18 }
  0xf0   : > { %v436_v34 = vadd.f32 %v1382_v8, %v426_v2  ;;  %v1426_v50 = vrot.slane %v2103_v28, 11  ;;  %v988_v56 = vstv %s2112_s28  ;;  %v996_v33 = vstv %s2114_s21  ;;  %s1445_s21 = sshll.u32 %s2867_s7, 7 }
  0xf1   : > { %v1384_v57 = vrot.slane %v452_v0, 11  ;;  %v486_v63 = vmul.f32 %v485_v27, %v2107_v49  ;;  %v487_v26 = vmul.f32 %v485_v27, %v2110_v62  ;;  %v462_v14 = vcombine.low %v458_v25, %v459_v52 }
  0xf2   : > { %v446_v17 = vadd.f32 %v1383_v45, %v436_v34  ;;  %v942_v15 = vadd.f32 %v1425_v55, %v935_v43  ;;  %v1006_v28 = vstv %s2135_s25  ;;  %v480_v2 = vcombine.low %v476_v10, %v477_v11  ;;  %s2871_s25 = sshll.u32 %s2868_s27, 3 }
  0xf3   : > { %v504_v8 = vmul.f32 %v503_v37, %v2163_v9  ;;  %v505_v0 = vmul.f32 %v503_v37, %v2166_v4  ;;  %v392_v34 = vsel %vm391_vm9, %v388_v21, %v390_v47  ;;  %v496_v27 = vmul.f32 %v495_v35, %v2163_v9 }
  0xf4   : > { %v456_v18 = vadd.f32 %v1384_v57, %v446_v17  ;;  %v497_v55 = vmul.f32 %v495_v35, %v2166_v4  ;;  %v895_v43 = vstv %s2151_s5  ;;  %v1385_v52 = vrot.slane %v470_v46, 9  ;;  %s241_s5 = scalar_lea.vmem [#allocation10], %s2871_s25 }
  0xf5   : > { %v490_v45 = vcombine.low %v486_v63, %v487_v26  ;;  %v905_v10 = vstv %s2160_s23  ;;  %v393_v37 = vsel %vm391_vm9, %v390_v47, %v388_v21  ;;  %v915_v11 = vstv %s2170_s14  ;;  %s2258_s23 = sld [smem:[#allocation7 + $0x2e]]  ;;  %s1584_s14 = sshll.u32 %s1664_s0, 4  ;;  %s1585_s14 = int_to_ptr.vmem [resolvable:$false] %s1584_s14 }
  0xf6   : > { %v464_v25 = vadd.f32 %v462_v14, %v456_v18  ;;  %v2214_v17 = vadd.f32 %v1426_v50, %v942_v15  ;;  %v1026_v57 = vstv %s2168_s26  ;;  %v2218_v35 = vmul.f32 %v1925_v12, %v392_v34  ;;  %s2297_s26 = sld [smem:[#allocation7 + $0x3e]] }
  0xf7   : > { %v1386_v14 = vrot.slane %v480_v2, 10  ;;  %v508_v46 = vcombine.low %v504_v8, %v505_v0  ;;  %v500_v63 = vcombine.low %v496_v27, %v497_v55  ;;  %v514_v3 = vmul.f32 %v513_v41, %v2163_v9 }
  0xf8   : > { %v474_v16 = vadd.f32 %v1385_v52, %v464_v25  ;;  %v515_v47 = vmul.f32 %v513_v41, %v2166_v4  ;;  %v597_v50 = vmul.f32 %v596_v19, %v2098_v61  ;;  %v1387_v26 = vrot.slane %v490_v45, 11 }
  0xf9   : > { %v598_v12 = vmul.f32 %v596_v19, %v2090_v51  ;;  %v605_v15 = vmul.f32 %v604_v20, %v2098_v61  ;;  %v2236_v18 = vmul.f32 %v1931_v13, %v393_v37  ;;  %v524_v41 = vmul.f32 %v523_v42, %v2163_v9 }
  0xfa   : > { %v484_v21 = vadd.f32 %v1386_v14, %v474_v16  ;;  %v606_v2 = vmul.f32 %v604_v20, %v2090_v51  ;;  %v615_v16 = vmul.f32 %v614_v22, %v2098_v61  ;;  %v1388_v0 = vrot.slane %v508_v46, 9 }
  0xfb   : > { %v601_v19 = vcombine.low %v597_v50, %v598_v12  ;;  %v616_v34 = vmul.f32 %v614_v22, %v2090_v51  ;;  %v518_v13 = vcombine.low %v514_v3, %v515_v47  ;;  %v625_v55 = vmul.f32 %v624_v23, %v2098_v61 }
  0xfc   : > { %v494_v8 = vadd.f32 %v1387_v26, %v484_v21  ;;  %v609_v27 = vcombine.low %v605_v15, %v606_v2  ;;  %v626_v20 = vmul.f32 %v624_v23, %v2090_v51  ;;  %v525_v22 = vmul.f32 %v523_v42, %v2166_v4 }
  0xfd   : > { %v603_v52 = vadd.f32 %v601_v19, %v2077_v6  ;;  %v619_v45 = vcombine.low %v615_v16, %v616_v34  ;;  %v534_v37 = vmul.f32 %v533_v5, %v2218_v35  ;;  %v643_v46 = vmul.f32 %v642_v31, %v2107_v49 }
  0xfe   : > { %v502_v25 = vadd.f32 %v500_v63, %v494_v8  ;;  %v1397_v14 = vrot.slane %v609_v27, 9  ;;  %v629_v23 = vcombine.low %v625_v55, %v626_v20  ;;  %v635_v63 = vmul.f32 %v634_v30, %v2107_v49 }
  0xff   : > { %v636_v42 = vmul.f32 %v634_v30, %v2110_v62  ;;  %v644_v6 = vmul.f32 %v642_v31, %v2110_v62  ;;  %v1398_v50 = vrot.slane %v619_v45, 10  ;;  %v653_v21 = vmul.f32 %v652_v32, %v2107_v49 }
 0x100   : > { %v512_v3 = vadd.f32 %v1388_v0, %v502_v25  ;;  %v613_v47 = vadd.f32 %v1397_v14, %v603_v52  ;;  %v654_v26 = vmul.f32 %v652_v32, %v2110_v62  ;;  %v1389_v30 = vrot.slane %v518_v13, 10 }
 0x101   : > { %v528_v12 = vcombine.low %v524_v41, %v525_v22  ;;  %v535_v31 = vmul.f32 %v533_v5, %v2236_v18  ;;  %v542_v15 = vmul.f32 %v541_v38, %v2218_v35  ;;  %v543_v32 = vmul.f32 %v541_v38, %v2236_v18 }
 0x102   : > { %v623_v2 = vadd.f32 %v1398_v50, %v613_v47  ;;  %v1399_v16 = vrot.slane %v629_v23, 11  ;;  %v647_v41 = vcombine.low %v643_v46, %v644_v6  ;;  %v552_v5 = vmul.f32 %v551_v39, %v2218_v35 }
 0x103   : > { %v553_v8 = vmul.f32 %v551_v39, %v2236_v18  ;;  %v663_v0 = vmul.f32 %v662_v36, %v2107_v49  ;;  %v664_v19 = vmul.f32 %v662_v36, %v2110_v62  ;;  %v522_v34 = vadd.f32 %v1389_v30, %v512_v3 }
 0x104   : > { %v633_v38 = vadd.f32 %v1399_v16, %v623_v2  ;;  %v639_v13 = vcombine.low %v635_v63, %v636_v42  ;;  %v657_v27 = vcombine.low %v653_v21, %v654_v26  ;;  %v1390_v55 = vrot.slane %v528_v12, 11 }
 0x105   : > { %v562_v20 = vmul.f32 %v561_v40, %v2218_v35  ;;  %v1034_v25 = vstv %s2256_s20  ;;  %v1044_v39 = vstv %s2258_s23  ;;  %v546_v22 = vcombine.low %v542_v15, %v543_v32  ;;  %s1186_s23 = sshll.u32 %s241_s5, 4  ;;  %s2619_s23 = int_to_ptr.vmem [resolvable:$true] %s1186_s23 }
 0x106   : > { %v563_v52 = vmul.f32 %v561_v40, %v2236_v18  ;;  %v641_v36 = vadd.f32 %v639_v13, %v633_v38  ;;  %v1400_v45 = vrot.slane %v647_v41, 9  ;;  %v556_v14 = vcombine.low %v552_v5, %v553_v8  ;;  %s1580_s30 = scalar_lea.vmem %s2619_s23, 128  ;;  %p1587_p7 = scmp.lt.s32.totalorder %s2619_s23, %s1585_s14 }
 0x107   : > { %v667_v23 = vcombine.low %v663_v0, %v664_v19  ;;  %v673_v46 = vmul.f32 %v672_v48, %v2163_v9  ;;  %v674_v3 = vmul.f32 %v672_v48, %v2166_v4  ;;  %v532_v63 = vadd.f32 %v1390_v55, %v522_v34  ;;  %p1581_p6 = scmp.ne.s32.totalorder %s2619_s23, %s1580_s30 }
 0x108   : > { %v538_v42 = vcombine.low %v534_v37, %v535_v31  ;;  %v651_v6 = vadd.f32 %v1400_v45, %v641_v36  ;;  %v1401_v47 = vrot.slane %v657_v27, 10  ;;  %v681_v40 = vmul.f32 %v680_v58, %v2163_v9 }
 0x109   : > { %v682_v50 = vmul.f32 %v680_v58, %v2166_v4  ;;  %v1054_v21 = vstv %s2285_s10  ;;  %v1064_v26 = vstv %s2287_s18  ;;  %v566_v30 = vcombine.low %v562_v20, %v563_v52  ;;  %s2872_s18 = sld [smem:[#allocation55_spill]]  ;;  %p1582_p13 = pnand %p1581_p6, %p1772_p8 }
 0x10a   : > { %v661_v12 = vadd.f32 %v1401_v47, %v651_v6  ;;  %v1072_v48 = vstv %s2295_s29  ;;  %v1082_v37 = vstv %s2297_s26  ;;  %v1391_v31 = vrot.slane %v546_v22, 9 }
 0x10b   : > { %v2338_v15 = vrot.slane %v556_v14, 10  ;;  %v1402_v32 = vrot.slane %v667_v23, 11  ;;  %v677_v2 = vcombine.low %v673_v46, %v674_v3  ;;  %v540_v58 = vadd.f32 %v538_v42, %v532_v63  ;;  %p1583_p3 = pneg %p1582_p13 }
 0x10c   : > { %v691_v16 = vmul.f32 %v690_v59, %v2163_v9  ;;  %v774_v41 = vmul.f32 %v773_v24, %v2098_v61  ;;  %v775_v5 = vmul.f32 %v773_v24, %v2090_v51  ;;  %v685_v0 = vcombine.low %v681_v40, %v682_v50 }
 0x10d   : > { %v671_v8 = vadd.f32 %v1402_v32, %v661_v12  ;;  %v692_v19 = vmul.f32 %v690_v59, %v2166_v4  ;;  %v782_v34 = vmul.f32 %v781_v44, %v2098_v61  ;;  %v2355_v38 = vrot.slane %v566_v30, 11 }
 0x10e   : > { %v701_v13 = vmul.f32 %v700_v60, %v2163_v9  ;;  %v778_v27 = vcombine.low %v774_v41, %v775_v5  ;;  %v783_v55 = vmul.f32 %v781_v44, %v2090_v51  ;;  %v702_v24 = vmul.f32 %v700_v60, %v2166_v4 }
 0x10f   : > { %v2824_v20 = vstv %s2822_s15  ;;  %v2826_v36 = vstv %s2823_s6  ;;  %v550_v14 = vadd.f32 %v1391_v31, %v540_v58  ;;  %v679_v3 = vadd.f32 %v677_v2, %v671_v8  ;;  %s2873_s29 = smov %s2872_s18  ;;  %s2617_s26 = scalar_lea.hbm %s2872_s18, %s1445_s21 }
 0x110   : > { %v792_v59 = vmul.f32 %v2824_v20, %v2098_v61  ;;  %v2825_v22 = vmov %v2824_v20  ;;  %v802_v45 = vmul.f32 %v2826_v36, %v2098_v61  ;;  %v780_v44 = vadd.f32 %v778_v27, %v2100_v29  ;;  %s1586_s15 = scalar_lea.vmem %s1585_s14, 256 }
 0x111   : > { %v793_v52 = vmul.f32 %v2825_v22, %v2090_v51  ;;  %v786_v23 = vcombine.low %v782_v34, %v783_v55  ;;  %v2827_v46 = vmov %v2826_v36  ;;  %v1403_v63 = vrot.slane %v685_v0, 9  ;;  %p1588_p12 = scmp.lt.s32.totalorder %s1586_s15, %s1580_s30 }
 0x112   : > { %v803_v60 = vmul.f32 %v2827_v46, %v2090_v51  ;;  %v695_v42 = vcombine.low %v691_v16, %v692_v19  ;;  %v2828_v50 = vstv %s1972_s16  ;;  %v2830_v31 = vstv %s2003_s8  ;;  %s2848_s16 = sld [smem:[#allocation51_spill]]  ;;  %s1372_s8 = sld [smem:[#allocation8 + $0x3]] }
 0x113   : > { %v796_v6 = vcombine.low %v792_v59, %v793_v52  ;;  %v1412_v47 = vrot.slane %v786_v23, 9  ;;  %v820_v30 = vmul.f32 %v2828_v50, %v2107_v49  ;;  %v2829_v12 = vmov %v2828_v50  ;;  %p1589_p0 = por %p1588_p12, %p1587_p7 }
 0x114   : > { %v806_v40 = vcombine.low %v802_v45, %v803_v60  ;;  %v821_v29 = vmul.f32 %v2829_v12, %v2110_v62  ;;  %v2388_v32 = vmul.f32 %v2830_v31, %v2218_v35  ;;  %v2831_v2 = vmov %v2830_v31 }
 0x115   : > { %v2393_v58 = vmul.f32 %v2831_v2, %v2236_v18  ;;  %v2832_v16 = vstv %s1966_s11  ;;  %v790_v0 = vadd.f32 %v1412_v47, %v780_v44  ;;  %v1413_v19 = vrot.slane %v796_v6, 10  ;;  %s2847_s11 = sld [smem:[#allocation50_spill]]  ;;  %p1590_p2 = pnand %p1589_p0, %p1583_p3 }
 0x116   : > { %v812_v41 = vmul.f32 %v2832_v16, %v2107_v49  ;;  %v2833_v5 = vmov %v2832_v16  ;;  %v2834_v34 = vstv %s1996_s4  ;;  %v689_v59 = vadd.f32 %v1403_v63, %v679_v3  ;;  %s2567_s4 = sld [smem:[#allocation8 + $0x2]] }
 0x117   : > { %v813_v8 = vmul.f32 %v2833_v5, %v2110_v62  ;;  %v830_v27 = vmul.f32 %v2834_v34, %v2107_v49  ;;  %v2835_v55 = vmov %v2834_v34  ;;  %v2836_v22 = vstv %s2005_s19  ;;  %s2842_s19 = sld [smem:[#allocation48_spill]] }
 0x118   : > { %v831_v20 = vmul.f32 %v2835_v55, %v2110_v62  ;;  %v719_v52 = vmul.f32 %v2836_v22, %v2218_v35  ;;  %v2837_v36 = vmov %v2836_v22  ;;  %v1414_v23 = vrot.slane %v806_v40, 11 }
 0x119   : > { %v720_v45 = vmul.f32 %v2837_v36, %v2236_v18  ;;  %v800_v46 = vadd.f32 %v1413_v19, %v790_v0  ;;  %v824_v44 = vcombine.low %v820_v30, %v821_v29  ;;  %v2838_v60 = vstv %s1998_s17  ;;  %s2865_s17 = sld [smem:[#allocation49_spill]] }
 0x11a   : > { %v840_v6 = vmul.f32 %v2838_v60, %v2107_v49  ;;  %v2839_v47 = vmov %v2838_v60  ;;  %v1404_v12 = vrot.slane %v695_v42, 10  ;;  %v705_v3 = vcombine.low %v701_v13, %v702_v24 }
 0x11b   : > { %v841_v50 = vmul.f32 %v2839_v47, %v2110_v62  ;;  %v858_v63 = vmul.f32 %v857_v7, %v2163_v9  ;;  %v859_v31 = vmul.f32 %v857_v7, %v2166_v4  ;;  %v2840_v40 = vstv %s2011_s3  ;;  %s326_s3 = sld [smem:[#allocation2]] }
 0x11c   : > { %v2428_v2 = vmul.f32 %v2840_v40, %v2218_v35  ;;  %v810_v30 = vadd.f32 %v1414_v23, %v800_v46  ;;  %v816_v29 = vcombine.low %v812_v41, %v813_v8  ;;  %v834_v16 = vcombine.low %v830_v27, %v831_v20 }
 0x11d   : > { %v699_v5 = vadd.f32 %v1404_v12, %v689_v59  ;;  %v723_v0 = vcombine.low %v719_v52, %v720_v45  ;;  %v2841_v42 = vmov %v2840_v40  ;;  %v850_v24 = vmul.f32 %v849_v54, %v2163_v9 }
 0x11e   : > { %v2433_v13 = vmul.f32 %v2841_v42, %v2236_v18  ;;  %v818_v7 = vadd.f32 %v816_v29, %v810_v30  ;;  %v1415_v19 = vrot.slane %v824_v44, 9  ;;  %v844_v34 = vcombine.low %v840_v6, %v841_v50 }
 0x11f   : > { %v851_v41 = vmul.f32 %v849_v54, %v2166_v4  ;;  %v2442_v8 = vadd.f32 %v2338_v15, %v550_v14  ;;  %v1405_v27 = vrot.slane %v705_v3, 11  ;;  %v715_v55 = vcombine.low %v2388_v32, %v2393_v58 }
 0x120   : > { %v862_v20 = vcombine.low %v858_v63, %v859_v31  ;;  %v828_v59 = vadd.f32 %v1415_v19, %v818_v7  ;;  %v1416_v22 = vrot.slane %v834_v16, 10  ;;  %v2843_v52 = vstv %s2041_s2  ;;  %s2869_s2 = sld [smem:[#allocation25_spill]] }
 0x121   : > { %v868_v36 = vmul.f32 %v2843_v52, %v2163_v9  ;;  %v2844_v45 = vmov %v2843_v52  ;;  %v2452_v15 = vrot.slane %v723_v0, 9  ;;  %v733_v14 = vcombine.low %v2428_v2, %v2433_v13 }
 0x122   : > { %v869_v54 = vmul.f32 %v2844_v45, %v2166_v4  ;;  %v2845_v32 = vstv %s2018_s22  ;;  %v709_v44 = vadd.f32 %v1405_v27, %v699_v5  ;;  %v838_v60 = vadd.f32 %v1416_v22, %v828_v59  ;;  %s2565_s22 = sld [smem:[#allocation8 + $0x1]] }
 0x123   : > { %v2459_v58 = vmul.f32 %v2845_v32, %v2218_v35  ;;  %v2846_v23 = vmov %v2845_v32  ;;  %v1417_v6 = vrot.slane %v844_v34, 11  ;;  %v854_v47 = vcombine.low %v850_v24, %v851_v41 }
 0x124   : > { %v2464_v46 = vmul.f32 %v2846_v23, %v2236_v18  ;;  %v1418_v50 = vrot.slane %v862_v20, 9  ;;  %v2849_v12 = vstv %s2049_s24  ;;  %v2851_v40 = vstv %s2842_s19 }
 0x125   : > { %v878_v3 = vmul.f32 %v2849_v12, %v2163_v9  ;;  %v2850_v63 = vmov %v2849_v12  ;;  %v951_v30 = vmul.f32 %v2851_v40, %v2098_v61  ;;  %v848_v29 = vadd.f32 %v1417_v6, %v838_v60 }
 0x126   : > { %v879_v31 = vmul.f32 %v2850_v63, %v2166_v4  ;;  %v872_v16 = vcombine.low %v868_v36, %v869_v54  ;;  %v2852_v5 = vmov %v2851_v40  ;;  %v2853_v42 = vstv %s2047_s9 }
 0x127   : > { %v952_v0 = vmul.f32 %v2852_v5, %v2090_v51  ;;  %v959_v24 = vmul.f32 %v2853_v42, %v2098_v61  ;;  %v888_v7 = vmul.f32 %v887_v53, %v2218_v35  ;;  %v889_v19 = vmul.f32 %v887_v53, %v2236_v18 }
 0x128   : > { %v2854_v34 = vmov %v2853_v42  ;;  %v2855_v27 = vstv %s2847_s11  ;;  %v856_v59 = vadd.f32 %v854_v47, %v848_v29  ;;  %v2857_v45 = vstv %s2848_s16 }
 0x129   : > { %v960_v41 = vmul.f32 %v2854_v34, %v2090_v51  ;;  %v969_v20 = vmul.f32 %v2855_v27, %v2098_v61  ;;  %v955_v22 = vcombine.low %v951_v30, %v952_v0  ;;  %v2856_v52 = vmov %v2855_v27 }
 0x12a   : > { %v970_v36 = vmul.f32 %v2856_v52, %v2090_v51  ;;  %v979_v54 = vmul.f32 %v2857_v45, %v2098_v61  ;;  %v882_v53 = vcombine.low %v878_v3, %v879_v31  ;;  %v896_v32 = vmul.f32 %v895_v43, %v2218_v35 }
 0x12b   : > { %v963_v23 = vcombine.low %v959_v24, %v960_v41  ;;  %v2858_v60 = vmov %v2857_v45  ;;  %v866_v47 = vadd.f32 %v1418_v50, %v856_v59  ;;  %v1419_v12 = vrot.slane %v872_v16, 10 }
 0x12c   : > { %v980_v6 = vmul.f32 %v2858_v60, %v2090_v51  ;;  %v957_v63 = vadd.f32 %v955_v22, %v2214_v17  ;;  %v973_v40 = vcombine.low %v969_v20, %v970_v36  ;;  %v997_v61 = vmul.f32 %v996_v33, %v2107_v49 }
 0x12d   : > { %v1427_v30 = vrot.slane %v963_v23, 9  ;;  %v998_v3 = vmul.f32 %v996_v33, %v2110_v62  ;;  %v876_v31 = vadd.f32 %v1419_v12, %v866_v47  ;;  %v897_v51 = vmul.f32 %v895_v43, %v2236_v18 }
 0x12e   : > { %v983_v29 = vcombine.low %v979_v54, %v980_v6  ;;  %v989_v50 = vmul.f32 %v988_v56, %v2107_v49  ;;  %v990_v17 = vmul.f32 %v988_v56, %v2110_v62  ;;  %v1428_v5 = vrot.slane %v973_v40, 10 }
 0x12f   : > { %v967_v16 = vadd.f32 %v1427_v30, %v957_v63  ;;  %v1007_v0 = vmul.f32 %v1006_v28, %v2107_v49  ;;  %v1008_v33 = vmul.f32 %v1006_v28, %v2110_v62  ;;  %v717_v42 = vadd.f32 %v715_v55, %v709_v44 }
 0x130   : > { %v743_v43 = vcombine.low %v2459_v58, %v2464_v46  ;;  %v1420_v24 = vrot.slane %v882_v53, 11  ;;  %v1429_v34 = vrot.slane %v983_v29, 11  ;;  %v1001_v41 = vcombine.low %v997_v61, %v998_v3 }
 0x131   : > { %v977_v56 = vadd.f32 %v1428_v5, %v967_v16  ;;  %v2861_v27 = vstv %s2137_s1  ;;  %v892_v52 = vcombine.low %v888_v7, %v889_v19  ;;  %v900_v55 = vcombine.low %v896_v32, %v897_v51  ;;  %s2553_s1 = sld [smem:[#allocation7 + $0x3f]] }
 0x132   : > { %v1017_v20 = vmul.f32 %v2861_v27, %v2107_v49  ;;  %v2862_v59 = vmov %v2861_v27  ;;  %v886_v28 = vadd.f32 %v1420_v24, %v876_v31  ;;  %v993_v44 = vcombine.low %v989_v50, %v990_v17 }
 0x133   : > { %v1018_v22 = vmul.f32 %v2862_v59, %v2110_v62  ;;  %v987_v36 = vadd.f32 %v1429_v34, %v977_v56  ;;  %v1011_v58 = vcombine.low %v1007_v0, %v1008_v33  ;;  %v1035_v46 = vmul.f32 %v1034_v25, %v2163_v9 }
 0x134   : > { %v1036_v45 = vmul.f32 %v1034_v25, %v2166_v4  ;;  %v906_v49 = vmul.f32 %v905_v10, %v2218_v35  ;;  %v907_v62 = vmul.f32 %v905_v10, %v2236_v18  ;;  %v1027_v7 = vmul.f32 %v1026_v57, %v2163_v9 }
 0x135   : > { %v1028_v19 = vmul.f32 %v1026_v57, %v2166_v4  ;;  %v727_v54 = vadd.f32 %v2452_v15, %v717_v42  ;;  %v995_v53 = vadd.f32 %v993_v44, %v987_v36  ;;  %v1430_v25 = vrot.slane %v1001_v41, 9 }
 0x136   : > { %v1021_v32 = vcombine.low %v1017_v20, %v1018_v22  ;;  %v894_v23 = vadd.f32 %v892_v52, %v886_v28  ;;  %v1421_v60 = vrot.slane %v900_v55, 9  ;;  %v1045_v10 = vmul.f32 %v1044_v39, %v2163_v9 }
 0x137   : > { %v1046_v6 = vmul.f32 %v1044_v39, %v2166_v4  ;;  %v1407_v57 = vrot.slane %v733_v14, 10  ;;  %v1005_v47 = vadd.f32 %v1430_v25, %v995_v53  ;;  %v1431_v15 = vrot.slane %v1011_v58, 10 }
 0x138   : > { %v1039_v12 = vcombine.low %v1035_v46, %v1036_v45  ;;  %v910_v63 = vcombine.low %v906_v49, %v907_v62  ;;  %v916_v40 = vmul.f32 %v915_v11, %v2218_v35  ;;  %v917_v39 = vmul.f32 %v915_v11, %v2236_v18 }
 0x139   : > { %v1031_v30 = vcombine.low %v1027_v7, %v1028_v19  ;;  %v1015_v2 = vadd.f32 %v1431_v15, %v1005_v47  ;;  %v1432_v13 = vrot.slane %v1021_v32, 11  ;;  %v1055_v14 = vmul.f32 %v1054_v21, %v2163_v9 }
 0x13a   : > { %v1056_v29 = vmul.f32 %v1054_v21, %v2166_v4  ;;  %v737_v61 = vadd.f32 %v1407_v57, %v727_v54  ;;  %v1408_v3 = vrot.slane %v743_v43, 11  ;;  %v904_v31 = vadd.f32 %v1421_v60, %v894_v23 }
 0x13b   : > { %v1049_v51 = vcombine.low %v1045_v10, %v1046_v6  ;;  %v1025_v50 = vadd.f32 %v1432_v13, %v1015_v2  ;;  %v1433_v17 = vrot.slane %v1039_v12, 9  ;;  %v1073_v11 = vmul.f32 %v1072_v48, %v2218_v35 }
 0x13c   : > { %v1074_v16 = vmul.f32 %v1072_v48, %v2236_v18  ;;  %v1422_v5 = vrot.slane %v910_v63, 10  ;;  %v920_v9 = vcombine.low %v916_v40, %v917_v39  ;;  %v1065_v4 = vmul.f32 %v1064_v26, %v2218_v35 }
 0x13d   : > { %v1066_v21 = vmul.f32 %v1064_v26, %v2236_v18  ;;  %v1033_v0 = vadd.f32 %v1031_v30, %v1025_v50  ;;  %v1059_v33 = vcombine.low %v1055_v14, %v1056_v29  ;;  %v1092_v42 = vstv %s2553_s1 }
 0x13e   : > { %v2864_v43 = vlaneseq  ;;  %v570_v34 = vadd.f32 %v2355_v38, %v2442_v8  ;;  %v747_v48 = vadd.f32 %v1408_v3, %v737_v61  ;;  %v914_v56 = vadd.f32 %v1422_v5, %v904_v31  ;;  %v1519_v5 = vld [vmem:[%s2869_s2] sm:$0xff] }
 0x13f   : > { %v1434_v41 = vrot.slane %v1049_v51, 10  ;;  %v1043_v27 = vadd.f32 %v1433_v17, %v1033_v0  ;;  %v1077_v20 = vcombine.low %v1073_v11, %v1074_v16  ;;  %v1083_v59 = vmul.f32 %v1082_v37, %v2218_v35 }
 0x140   : > { %v1106_v24 = vshrl.u32 %v2864_v43, 7  ;;  %v1084_v26 = vmul.f32 %v1082_v37, %v2236_v18  ;;  %v748_v22 = vstv %s2565_s22  ;;  %v1423_v28 = vrot.slane %v920_v9, 11 }
 0x141   : > { %v925_v52 = vstv %s2567_s4  ;;  %v1069_v55 = vcombine.low %v1065_v4, %v1066_v21  ;;  %v1053_v44 = vadd.f32 %v1434_v41, %v1043_v27  ;;  %v1435_v36 = vrot.slane %v1059_v33, 11 }
 0x142   : > { %v1093_v38 = vmul.f32 %v1092_v42, %v2218_v35  ;;  %v1094_v8 = vmul.f32 %v1092_v42, %v2236_v18  ;;  %v2866_v58 = vstv %s2865_s17  ;;  %v924_v45 = vadd.f32 %v1423_v28, %v914_v56 }
 0x143   : > { %v572_v46 = vadd.f32 %v2866_v58, %v570_v34  ;;  %v1107_v49 = vsub.s32 0, %v1106_v24  ;;  %v1111_v62 = vsub.s32 4, %v1106_v24  ;;  %v749_v7 = vadd.f32 %v748_v22, %v747_v48 }
 0x144   : > { %v1063_v19 = vadd.f32 %v1435_v36, %v1053_v44  ;;  %v1436_v54 = vrot.slane %v1077_v20, 9  ;;  %v1087_v37 = vcombine.low %v1083_v59, %v1084_v26  ;;  %v1097_v25 = vcombine.low %v1093_v38, %v1094_v8 }
 0x145   : > { %v926_v32 = vadd.f32 %v925_v52, %v924_v45  ;;  %v1108_v23 = vrot.slane %v572_v46, %v1107_v49  ;;  %v1112_v60 = vrot.slane %v572_v46, %v1111_v62  ;;  %v1119_v6 = vrot.slane %v749_v7, %v1107_v49 }
 0x146   : > { %v1071_v53 = vadd.f32 %v1069_v55, %v1063_v19  ;;  %v1437_v35 = vrot.slane %v1087_v37, 10  ;;  %v1123_v18 = vrot.slane %v749_v7, %v1111_v62  ;;  %v1438_v47 = vrot.slane %v1097_v25, 11 }
 0x147   : > { %v1102_v15 = vstv %s1372_s8  ;;  %v1130_v12 = vrot.slane %v926_v32, %v1107_v49  ;;  %v1134_v63 = vrot.slane %v926_v32, %v1111_v62  ;;  %v1149_v39 = vsel %vm1148_vm10, %v1108_v23, %v1119_v6 }
 0x148   : > { %v1081_v10 = vadd.f32 %v1436_v54, %v1071_v53  ;;  %v1150_v30 = vsel %vm1148_vm10, %v1112_v60, %v1123_v18  ;;  %v1159_v3 = vstv %s326_s3 }
 0x149   : > { %v1152_v13 = vsel %vm1151_vm11, %v1149_v39, %v1130_v12  ;;  %v1153_v14 = vsel %vm1151_vm11, %v1150_v30, %v1134_v63 }
 0x14a   : > { %v1091_v57 = vadd.f32 %v1437_v35, %v1081_v10 }
 0x14c   : > { %v1101_v40 = vadd.f32 %v1438_v47, %v1091_v57 }
 0x14e   : > { %v1103_v2 = vadd.f32 %v1102_v15, %v1101_v40 }
 0x150   : > { %v1141_v29 = vrot.slane %v1103_v2, %v1107_v49  ;;  %v1145_v61 = vrot.slane %v1103_v2, %v1111_v62 }
 0x152   : > { %v1155_v31 = vsel %vm1154_vm12, %v1152_v13, %v1141_v29  ;;  %v1156_v51 = vsel %vm1154_vm12, %v1153_v14, %v1145_v61 }
 0x153   : > { %vm1157_vm13 = vcmp.ge.f32.partialorder %v1155_v31, 0.0  ;;  %vm1158_vm14 = vcmp.ge.f32.partialorder %v1156_v51, 0.0  ;;  %v1160_v50 = vmul.f32 %v1159_v3, %v1155_v31  ;;  %v1161_v17 = vmul.f32 %v1159_v3, %v1156_v51 }
 0x155   : > { %v1162_v11 = vsel %vm1157_vm13, %v1155_v31, %v1160_v50  ;;  %v1163_v16 = vsel %vm1158_vm14, %v1156_v51, %v1161_v17 }
 0x156   : > { %v1164_v9 = vadd.f32 %v1519_v5, %v1162_v11  ;;  %v1165_v4 = vadd.f32 %v1163_v16, %v1845_v1 }
 0x158   : > { %v1168_v21 = vcombine.low %v1164_v9, %v1165_v4 }
 0x15a   : > { %1170 = vst [vmem:[%s241_s5] sm:$0xff] %v1168_v21 }
 0x15b   : > { %1593 = shalt.err (!%p1590_p2)
}
 0x15c   : > { %s1594_s6 = scalar_lea.hbm %s2617_s26, 128  ;;  %s1598_s16 = scalar_lea.hbm %s2873_s29, 256 }
 0x15d   : > { %p1595_p10 = scmp.ne.s32.totalorder %s2617_s26, %s1594_s6  ;;  %p1599_p1 = scmp.lt.u32.totalorder %s2617_s26, %s2873_s29 }
 0x15e   : > { %p1600_p9 = scmp.lt.u32.totalorder %s1598_s16, %s1594_s6  ;;  %p1602_p6 = scmp.lt.u32.totalorder %s1594_s6, %s2617_s26 }
 0x15f   : > { %p1596_p5 = pnand %p1595_p10, %p1772_p8 }
 0x160   : > { %p1601_p4 = por %p1600_p9, %p1599_p1 }
 0x161   : > { %p1597_p11 = pneg %p1596_p5 }
 0x162   : > { %p1603_p13 = por %p1602_p6, %p1601_p4 }
 0x164   : > { %p1604_p3 = pnand %p1603_p13, %p1597_p11 }
 0x166   : > { %1607 = shalt.err (!%p1604_p3)
}
 0x167   : > { %1456 = dma.vmem_to_hbm [thread:$0]  (%p1772_p8), %s2619_s23, 128, %s2617_s26, %s1172_s13  }
 0x168 PF: > { %s2874_s1 = sld [smem:[#allocation15_spill]]  ;;  %s2875_s24 = sld [smem:[#allocation20_spill]] }
 0x169   : > { %s2876_s22 = sld [smem:[#allocation18_spill]] }
 0x16e   : > { %s1198_s4 = sand.u32 1, %s2874_s1   ;;  %p2877_p7 = scmp.ne.s32.totalorder %s2875_s24, 0 }
 0x16f   : > { %p2878_p12 = scmp.ge.s32.totalorder %s2876_s22, 2  ;;  %s1199_s17 = scalar_lea.sflag [#allocation5], %s1198_s4 }
 0x171   : > { %p1470_p0 = pnand %p2878_p12, %p2877_p7 }
 0x173   : > { %1637 = dma.done.wait (!%p1470_p0), %s1199_s17, 128  }
 0x174   : > { %1639 = vsyncadd (!%p1470_p0), %s1199_s17, 4294967168  ;;  %s2879_s20 = sld [smem:[#allocation21_spill]]  ;;  %s2880_s17 = sld [smem:[#allocation16_spill]] }
 0x175   : > { %s2881_s18 = sld [smem:[#allocation17_spill]]  ;;  %s2882_s19 = sld [smem:[#allocation22_spill]] }
 0x17a   : > { %p20_p2 = scmp.ge.s32.totalorder %s2879_s20, 4  }
 0x17c   :  { %22 = sbr.rel (!%p20_p2) target bundleno = 13 (0xd), region = 90 }
 0x183   :  { %1204 = vsyncpa [#allocation4], 1 }
 0x184   :  { %1206 = vsyncpa [#allocation4 + $0x1], 1 }
 0x185   :  { %1207 = vsyncpa [#allocation5], 1 }
 0x186   :  { %1209 = vsyncpa [#allocation5 + $0x1], 1 }
 0x187   :  { %1210 = vsyncpa [#allocation6], 1 }
 0x188   :  { %1212 = vsyncpa [#allocation6 + $0x1], 1 }
 0x189   :  { %1213 = vsyncpa [#allocation9], 1 }

</bundles_post_ra>
